<compile_context>
chip_gen: v7x
topology: tpu7x:2x2x1
jax: 0.10.0
libtpu: 0.0.40
codegen_flags: <defaults>
</compile_context>

<pallas_src>
import functools

import jax
import jax.numpy as jnp
from jax.experimental import pallas as pl
from jax.experimental.pallas import tpu as pltpu

E_CHAR = 50          # fixed by the module
KERNEL_K = 5         # CNN kernel size (standard for this module)


def _round_up(x, m):
    return (x + m - 1) // m * m


def _char_cnn_highway_kernel(ids_ref, tcat_ref, bc_ref, wpg_ref, bpg_ref,
                             o_ref, panel_ref, pooled_ref):
    """One tile of words: fused char-lookup + conv1d + relu + maxpool + highway.

    ids_ref   : (tile_n, word_len) int32          character ids of each word
    tcat_ref  : (K*vocab_p, e_word_p) bf16        concatenated per-tap tables
    bc_ref    : (1, e_word_p) f32                 conv bias (zero-padded)
    wpg_ref   : (e_word_p, 2*e_word_p) bf16       [W_proj | W_gate] in x @ W form
    bpg_ref   : (1, 2*e_word_p) f32               [b_proj | b_gate]
    o_ref     : (tile_n, e_word_p) bf16           word embeddings (lane-dense)
    panel_ref : (tile_n, word_len*vocab_p) bf16   VMEM scratch: im2col one-hots
    pooled_ref: (tile_n, e_word_p) f32            VMEM scratch: max-pool accum
    """
    ids = ids_ref[...]                               # (tn, wl) int32
    tn, wl = ids.shape
    kv, e_word_p = tcat_ref.shape
    vocab_p = panel_ref.shape[1] // wl
    k = kv // vocab_p
    l_out = wl - k + 1

    # ---- im2col one-hot panel, built once into VMEM scratch -----------------
    # Each character position j occupies lanes [j*vocab_p, (j+1)*vocab_p):
    # static, 128-aligned stores; the slabs never stay live in vregs.
    col = jax.lax.broadcasted_iota(jnp.int32, (tn, vocab_p), 1)
    for j in range(wl):
        panel_ref[:, j * vocab_p:(j + 1) * vocab_p] = jnp.where(
            ids[:, j:j + 1] == col, 1.0, 0.0).astype(jnp.bfloat16)

    # ---- conv1d (all K taps fused) + max-pool over time ----------------------
    # conv[l] = panel[:, l*vocab_p:(l+K)*vocab_p] @ T_cat : one MXU matmul with
    # a K*128-deep contraction per output time step.  The accumulator lives in
    # VMEM scratch so each iteration's values die inside the iteration.
    for l in range(l_out):
        lhs = panel_ref[:, l * vocab_p:(l + k) * vocab_p]      # (tn, K*vocab_p)
        val = jnp.dot(lhs, tcat_ref[...], preferred_element_type=jnp.float32)
        if l == 0:
            pooled_ref[...] = val
        else:
            pooled_ref[...] = jnp.maximum(pooled_ref[...], val)

    # Bias-add and ReLU commute with the max-pool:
    #   max_l relu(conv_l + b) == relu(max_l conv_l + b)
    # so they run once here instead of per time step.
    x = jnp.maximum(pooled_ref[...] + bc_ref[...], 0.0)        # (tn, e_word_p)

    # ---- Highway: fused proj|gate matmul, split on a 128-aligned lane cut ----
    h = jnp.dot(x.astype(jnp.bfloat16), wpg_ref[...],
                preferred_element_type=jnp.float32) + bpg_ref[...]
    proj = jnp.maximum(h[:, :e_word_p], 0.0)
    gate = jax.nn.sigmoid(h[:, e_word_p:])
    o_ref[...] = (gate * proj + (1.0 - gate) * x).astype(o_ref.dtype)


def prepare_params(params):
    """One-time folding of module parameters into kernel-ready tensors.

    Hoisted out of the per-call jit so the einsum/pad/cast work is not
    re-materialized on every forward call.
    """
    emb = params["emb"]                              # (vocab, e_char), row 0 == 0
    wc, bc = params["wc"], params["bc"]              # (K, e_char, e_word), (1, e_word)
    wp, bp = params["wp"], params["bp"]              # (e_word, e_word), (1, e_word)
    wg, bg = params["wg"], params["bg"]

    vocab, _ = emb.shape
    k, _, e_word = wc.shape
    e_word_p = _round_up(e_word, 128)                # lane-dense matmuls/stores
    vocab_p = _round_up(vocab, 128)

    # Fold the char-embedding table into the conv: T[dk] = emb @ Wc[dk] (f32).
    # padding_idx=0 row of emb is zero, so T[:, 0, :] == 0 and padded rows/cols
    # stay exact zeros.  Concatenate taps along the contraction axis.
    t = jnp.einsum("vc,kco->kvo", emb, wc)           # (K, vocab, e_word)
    t = jnp.pad(t, ((0, 0), (0, vocab_p - vocab), (0, e_word_p - e_word)))
    tcat = t.reshape(k * vocab_p, e_word_p).astype(jnp.bfloat16)
    bc_p = jnp.pad(bc, ((0, 0), (0, e_word_p - e_word)))

    # Fuse highway proj|gate weights into one lane-dense matmul.
    pad2 = ((0, e_word_p - e_word), (0, e_word_p - e_word))
    wpg = jnp.concatenate([jnp.pad(wp, pad2), jnp.pad(wg, pad2)], axis=1)
    wpg = wpg.astype(jnp.bfloat16)                   # (e_word_p, 2*e_word_p)
    pad1 = ((0, 0), (0, e_word_p - e_word))
    bpg = jnp.concatenate([jnp.pad(bp, pad1), jnp.pad(bg, pad1)], axis=1)

    return dict(tcat=tcat, bc=bc_p, wpg=wpg, bpg=bpg)


@functools.partial(jax.jit,
                   static_argnames=("embed_size", "kernel_size", "tile_n"))
def model_embeddings_forward(char_ids, prepared, *, embed_size,
                             kernel_size=KERNEL_K, tile_n=512):
    """char_ids: (seq_len, batch, word_len) int32 -> (seq_len, batch, embed_size)."""
    tcat = prepared["tcat"]                          # (K*vocab_p, e_word_p) bf16
    bc = prepared["bc"]                              # (1, e_word_p) f32
    wpg = prepared["wpg"]                            # (e_word_p, 2*e_word_p) bf16
    bpg = prepared["bpg"]                            # (1, 2*e_word_p) f32

    seq_len, batch, word_len = char_ids.shape
    assert word_len >= kernel_size, "word_len must be >= conv kernel size"
    e_word_p = wpg.shape[0]
    vocab_p = tcat.shape[0] // kernel_size

    # Flatten words; pad the row count with char id 0 (padding row of emb is
    # zero, so padded rows are harmless and sliced off afterwards).
    n = seq_len * batch
    ids = char_ids.reshape(n, word_len).astype(jnp.int32)
    # Keep >=2 grid steps when n allows it (v7x has 2 TensorCores), tile_n a
    # multiple of 8, and never over-pad tiny inputs.
    cap = _round_up(max(-(-n // 2), 8), 8)
    tile_n = max(8, min(tile_n, cap))
    n_pad = _round_up(n, tile_n)
    ids = jnp.pad(ids, ((0, n_pad - n), (0, 0)))

    # NOTE: the grid-invariant operands (tcat/bc/wpg/bpg) are ~1 MB total; the
    # default double-buffering cost is negligible, so single-buffering them is
    # intentionally skipped.
    out = pl.pallas_call(
        _char_cnn_highway_kernel,
        out_shape=jax.ShapeDtypeStruct((n_pad, e_word_p), jnp.bfloat16),
        grid=(n_pad // tile_n,),
        in_specs=[
            pl.BlockSpec((tile_n, word_len), lambda i: (i, 0)),
            pl.BlockSpec((kernel_size * vocab_p, e_word_p), lambda i: (0, 0)),
            pl.BlockSpec((1, e_word_p), lambda i: (0, 0)),
            pl.BlockSpec((e_word_p, 2 * e_word_p), lambda i: (0, 0)),
            pl.BlockSpec((1, 2 * e_word_p), lambda i: (0, 0)),
        ],
        out_specs=pl.BlockSpec((tile_n, e_word_p), lambda i: (i, 0)),
        scratch_shapes=[
            pltpu.VMEM((tile_n, word_len * vocab_p), jnp.bfloat16),  # im2col panel
            pltpu.VMEM((tile_n, e_word_p), jnp.float32),             # max-pool acc
        ],
        compiler_params=pltpu.CompilerParams(
            dimension_semantics=("parallel",)),
    )(ids, tcat, bc, wpg, bpg)

    # TODO(synk): Dropout(0.3) is identity in inference mode; training-mode
    # dropout would use pltpu.prng_seed + pltpu.stateful_bernoulli in-kernel.
    # Kernel writes bf16 (half the HBM writeback); cast back to f32 here so the
    # caller-facing dtype matches the PyTorch module.
    return (out[:n, :embed_size].astype(jnp.float32)
            .reshape(seq_len, batch, embed_size))


def init_params(key, vocab_size, embed_size):
    """Deterministic synthetic parameters matching the module's shapes."""
    ks = jax.random.split(key, 6)
    emb = 0.1 * jax.random.normal(ks[0], (vocab_size, E_CHAR), jnp.float32)
    emb = emb.at[0].set(0.0)                                        # padding_idx=0
    # nn.Conv1d weight is (e_word, e_char, K); store as (K, e_char, e_word).
    wc = 0.1 * jax.random.normal(ks[1], (embed_size, E_CHAR, KERNEL_K), jnp.float32)
    wc = jnp.transpose(wc, (2, 1, 0))
    bc = 0.05 * jax.random.normal(ks[2], (1, embed_size), jnp.float32)
    # nn.Linear weight is (out,in); store transposed for x @ W.
    wp = 0.1 * jax.random.normal(ks[3], (embed_size, embed_size), jnp.float32)
    bp = jnp.zeros((1, embed_size), jnp.float32)
    wg = 0.1 * jax.random.normal(ks[4], (embed_size, embed_size), jnp.float32)
    bg = jnp.zeros((1, embed_size), jnp.float32)
    return dict(emb=emb, wc=wc, bc=bc, wp=wp, bp=bp, wg=wg, bg=bg)


def _reference_forward(char_ids, params):
    """Pure-JAX f32 reference of the PyTorch module (inference mode)."""
    emb, wc, bc = params["emb"], params["wc"], params["bc"]
    wp, bp, wg, bg = params["wp"], params["bp"], params["wg"], params["bg"]
    seq_len, batch, word_len = char_ids.shape
    k = wc.shape[0]
    x = emb[char_ids.reshape(-1, word_len)]                  # (n, wl, e_char)
    windows = [jnp.einsum("nkc,kco->no", x[:, l:l + k, :], wc)
               for l in range(word_len - k + 1)]
    conv = jnp.stack(windows, axis=1) + bc                   # (n, l_out, e_word)
    pooled = jnp.max(jax.nn.relu(conv), axis=1)              # (n, e_word)
    proj = jax.nn.relu(pooled @ wp + bp)
    gate = jax.nn.sigmoid(pooled @ wg + bg)
    hw = gate * proj + (1.0 - gate) * pooled
    return hw.reshape(seq_len, batch, -1)


if __name__ == "__main__":
    key = jax.random.PRNGKey(0)
    seq_len, batch, word_len = 8, 2, 8          # small demo shapes
    vocab_size, embed_size = 30, 32

    k_ids, k_params = jax.random.split(key)
    char_ids = jax.random.randint(k_ids, (seq_len, batch, word_len), 0, vocab_size,
                                  dtype=jnp.int32)
    params = init_params(k_params, vocab_size, embed_size)
    prepared = prepare_params(params)           # one-time parameter folding

    out = model_embeddings_forward(char_ids, prepared, embed_size=embed_size)
    out = jax.block_until_ready(out)
    assert out.shape == (seq_len, batch, embed_size), out.shape
    assert jnp.all(jnp.isfinite(out))

    # Loose tolerance: tables/weights/output travel as bf16, accumulation f32.
    ref = _reference_forward(char_ids, params)
    max_err = float(jnp.max(jnp.abs(out - ref)))
    assert max_err < 5e-2, f"max abs error vs f32 reference: {max_err}"

    print("KERNEL_OK")
</pallas_src>

<mosaic_0001>
module attributes {stable_mosaic.version = 11 : i64} {
  func.func @_char_cnn_highway_kernel(%arg0: i32, %arg1: memref<8x8xi32, #tpu.memory_space<vmem>>, %arg2: memref<640x128xbf16, #tpu.memory_space<vmem>>, %arg3: memref<1x128xf32, #tpu.memory_space<vmem>>, %arg4: memref<128x256xbf16, #tpu.memory_space<vmem>>, %arg5: memref<1x256xf32, #tpu.memory_space<vmem>>, %arg6: memref<8x128xbf16, #tpu.memory_space<vmem>>, %arg7: memref<8x1024xbf16, #tpu.memory_space<vmem>>, %arg8: memref<8x128xf32, #tpu.memory_space<vmem>>) attributes {dimension_semantics = [#tpu.dimension_semantics<parallel>], iteration_bounds = array<i64: 2>, scalar_prefetch = 0 : i64, scratch_operands = 2 : i64, tpu.core_type = #tpu.core_type<tc>, window_params = [{transform_indices = @transform_0, window_bounds = array<i64: 8, 8>}, {pipeline_mode = #tpu.pipeline_mode<synchronous>, transform_indices = @transform_1, window_bounds = array<i64: 640, 128>}, {pipeline_mode = #tpu.pipeline_mode<synchronous>, transform_indices = @transform_2, window_bounds = array<i64: 1, 128>}, {pipeline_mode = #tpu.pipeline_mode<synchronous>, transform_indices = @transform_3, window_bounds = array<i64: 128, 256>}, {pipeline_mode = #tpu.pipeline_mode<synchronous>, transform_indices = @transform_4, window_bounds = array<i64: 1, 256>}, {transform_indices = @transform_5, window_bounds = array<i64: 8, 128>}]} {
    %c0 = arith.constant 0 : index
    %c0_0 = arith.constant 0 : index
    %0 = vector.load %arg1[%c0, %c0_0] : memref<8x8xi32, #tpu.memory_space<vmem>>, vector<8x8xi32>
    %1 = tpu.iota {dimensions = array<i32: 1>} : vector<8x128xi32>
    %2 = vector.extract_strided_slice %0 {offsets = [0, 0], sizes = [8, 1], strides = [1, 1]} : vector<8x8xi32> to vector<8x1xi32>
    %3 = vector.broadcast %2 : vector<8x1xi32> to vector<8x128xi32>
    %4 = arith.cmpi eq, %3, %1 : vector<8x128xi32>
    %cst = arith.constant 1.000000e+00 : f32
    %cst_1 = arith.constant 0.000000e+00 : f32
    %5 = vector.broadcast %cst : f32 to vector<8x128xf32>
    %6 = vector.broadcast %cst_1 : f32 to vector<8x128xf32>
    %7 = arith.select %4, %5, %6 : vector<8x128xi1>, vector<8x128xf32>
    %8 = arith.truncf %7 : vector<8x128xf32> to vector<8x128xbf16>
    %c0_2 = arith.constant 0 : index
    %c0_3 = arith.constant 0 : index
    %9 = vector.load %arg7[%c0_2, %c0_3] : memref<8x1024xbf16, #tpu.memory_space<vmem>>, vector<8x128xbf16>
    tpu.vector_store %arg7[%c0_2, %c0_3], %8 {strides = array<i32>} : memref<8x1024xbf16, #tpu.memory_space<vmem>>, vector<8x128xbf16>,
    %10 = vector.extract_strided_slice %0 {offsets = [0, 1], sizes = [8, 1], strides = [1, 1]} : vector<8x8xi32> to vector<8x1xi32>
    %11 = vector.broadcast %10 : vector<8x1xi32> to vector<8x128xi32>
    %12 = arith.cmpi eq, %11, %1 : vector<8x128xi32>
    %cst_4 = arith.constant 1.000000e+00 : f32
    %cst_5 = arith.constant 0.000000e+00 : f32
    %13 = vector.broadcast %cst_4 : f32 to vector<8x128xf32>
    %14 = vector.broadcast %cst_5 : f32 to vector<8x128xf32>
    %15 = arith.select %12, %13, %14 : vector<8x128xi1>, vector<8x128xf32>
    %16 = arith.truncf %15 : vector<8x128xf32> to vector<8x128xbf16>
    %c0_6 = arith.constant 0 : index
    %c128 = arith.constant 128 : index
    %17 = vector.load %arg7[%c0_6, %c128] : memref<8x1024xbf16, #tpu.memory_space<vmem>>, vector<8x128xbf16>
    tpu.vector_store %arg7[%c0_6, %c128], %16 {strides = array<i32>} : memref<8x1024xbf16, #tpu.memory_space<vmem>>, vector<8x128xbf16>,
    %18 = vector.extract_strided_slice %0 {offsets = [0, 2], sizes = [8, 1], strides = [1, 1]} : vector<8x8xi32> to vector<8x1xi32>
    %19 = vector.broadcast %18 : vector<8x1xi32> to vector<8x128xi32>
    %20 = arith.cmpi eq, %19, %1 : vector<8x128xi32>
    %cst_7 = arith.constant 1.000000e+00 : f32
    %cst_8 = arith.constant 0.000000e+00 : f32
    %21 = vector.broadcast %cst_7 : f32 to vector<8x128xf32>
    %22 = vector.broadcast %cst_8 : f32 to vector<8x128xf32>
    %23 = arith.select %20, %21, %22 : vector<8x128xi1>, vector<8x128xf32>
    %24 = arith.truncf %23 : vector<8x128xf32> to vector<8x128xbf16>
    %c0_9 = arith.constant 0 : index
    %c256 = arith.constant 256 : index
    %25 = vector.load %arg7[%c0_9, %c256] : memref<8x1024xbf16, #tpu.memory_space<vmem>>, vector<8x128xbf16>
    tpu.vector_store %arg7[%c0_9, %c256], %24 {strides = array<i32>} : memref<8x1024xbf16, #tpu.memory_space<vmem>>, vector<8x128xbf16>,
    %26 = vector.extract_strided_slice %0 {offsets = [0, 3], sizes = [8, 1], strides = [1, 1]} : vector<8x8xi32> to vector<8x1xi32>
    %27 = vector.broadcast %26 : vector<8x1xi32> to vector<8x128xi32>
    %28 = arith.cmpi eq, %27, %1 : vector<8x128xi32>
    %cst_10 = arith.constant 1.000000e+00 : f32
    %cst_11 = arith.constant 0.000000e+00 : f32
    %29 = vector.broadcast %cst_10 : f32 to vector<8x128xf32>
    %30 = vector.broadcast %cst_11 : f32 to vector<8x128xf32>
    %31 = arith.select %28, %29, %30 : vector<8x128xi1>, vector<8x128xf32>
    %32 = arith.truncf %31 : vector<8x128xf32> to vector<8x128xbf16>
    %c0_12 = arith.constant 0 : index
    %c384 = arith.constant 384 : index
    %33 = vector.load %arg7[%c0_12, %c384] : memref<8x1024xbf16, #tpu.memory_space<vmem>>, vector<8x128xbf16>
    tpu.vector_store %arg7[%c0_12, %c384], %32 {strides = array<i32>} : memref<8x1024xbf16, #tpu.memory_space<vmem>>, vector<8x128xbf16>,
    %34 = vector.extract_strided_slice %0 {offsets = [0, 4], sizes = [8, 1], strides = [1, 1]} : vector<8x8xi32> to vector<8x1xi32>
    %35 = vector.broadcast %34 : vector<8x1xi32> to vector<8x128xi32>
    %36 = arith.cmpi eq, %35, %1 : vector<8x128xi32>
    %cst_13 = arith.constant 1.000000e+00 : f32
    %cst_14 = arith.constant 0.000000e+00 : f32
    %37 = vector.broadcast %cst_13 : f32 to vector<8x128xf32>
    %38 = vector.broadcast %cst_14 : f32 to vector<8x128xf32>
    %39 = arith.select %36, %37, %38 : vector<8x128xi1>, vector<8x128xf32>
    %40 = arith.truncf %39 : vector<8x128xf32> to vector<8x128xbf16>
    %c0_15 = arith.constant 0 : index
    %c512 = arith.constant 512 : index
    %41 = vector.load %arg7[%c0_15, %c512] : memref<8x1024xbf16, #tpu.memory_space<vmem>>, vector<8x128xbf16>
    tpu.vector_store %arg7[%c0_15, %c512], %40 {strides = array<i32>} : memref<8x1024xbf16, #tpu.memory_space<vmem>>, vector<8x128xbf16>,
    %42 = vector.extract_strided_slice %0 {offsets = [0, 5], sizes = [8, 1], strides = [1, 1]} : vector<8x8xi32> to vector<8x1xi32>
    %43 = vector.broadcast %42 : vector<8x1xi32> to vector<8x128xi32>
    %44 = arith.cmpi eq, %43, %1 : vector<8x128xi32>
    %cst_16 = arith.constant 1.000000e+00 : f32
    %cst_17 = arith.constant 0.000000e+00 : f32
    %45 = vector.broadcast %cst_16 : f32 to vector<8x128xf32>
    %46 = vector.broadcast %cst_17 : f32 to vector<8x128xf32>
    %47 = arith.select %44, %45, %46 : vector<8x128xi1>, vector<8x128xf32>
    %48 = arith.truncf %47 : vector<8x128xf32> to vector<8x128xbf16>
    %c0_18 = arith.constant 0 : index
    %c640 = arith.constant 640 : index
    %49 = vector.load %arg7[%c0_18, %c640] : memref<8x1024xbf16, #tpu.memory_space<vmem>>, vector<8x128xbf16>
    tpu.vector_store %arg7[%c0_18, %c640], %48 {strides = array<i32>} : memref<8x1024xbf16, #tpu.memory_space<vmem>>, vector<8x128xbf16>,
    %50 = vector.extract_strided_slice %0 {offsets = [0, 6], sizes = [8, 1], strides = [1, 1]} : vector<8x8xi32> to vector<8x1xi32>
    %51 = vector.broadcast %50 : vector<8x1xi32> to vector<8x128xi32>
    %52 = arith.cmpi eq, %51, %1 : vector<8x128xi32>
    %cst_19 = arith.constant 1.000000e+00 : f32
    %cst_20 = arith.constant 0.000000e+00 : f32
    %53 = vector.broadcast %cst_19 : f32 to vector<8x128xf32>
    %54 = vector.broadcast %cst_20 : f32 to vector<8x128xf32>
    %55 = arith.select %52, %53, %54 : vector<8x128xi1>, vector<8x128xf32>
    %56 = arith.truncf %55 : vector<8x128xf32> to vector<8x128xbf16>
    %c0_21 = arith.constant 0 : index
    %c768 = arith.constant 768 : index
    %57 = vector.load %arg7[%c0_21, %c768] : memref<8x1024xbf16, #tpu.memory_space<vmem>>, vector<8x128xbf16>
    tpu.vector_store %arg7[%c0_21, %c768], %56 {strides = array<i32>} : memref<8x1024xbf16, #tpu.memory_space<vmem>>, vector<8x128xbf16>,
    %58 = vector.extract_strided_slice %0 {offsets = [0, 7], sizes = [8, 1], strides = [1, 1]} : vector<8x8xi32> to vector<8x1xi32>
    %59 = vector.broadcast %58 : vector<8x1xi32> to vector<8x128xi32>
    %60 = arith.cmpi eq, %59, %1 : vector<8x128xi32>
    %cst_22 = arith.constant 1.000000e+00 : f32
    %cst_23 = arith.constant 0.000000e+00 : f32
    %61 = vector.broadcast %cst_22 : f32 to vector<8x128xf32>
    %62 = vector.broadcast %cst_23 : f32 to vector<8x128xf32>
    %63 = arith.select %60, %61, %62 : vector<8x128xi1>, vector<8x128xf32>
    %64 = arith.truncf %63 : vector<8x128xf32> to vector<8x128xbf16>
    %c0_24 = arith.constant 0 : index
    %c896 = arith.constant 896 : index
    %65 = vector.load %arg7[%c0_24, %c896] : memref<8x1024xbf16, #tpu.memory_space<vmem>>, vector<8x128xbf16>
    tpu.vector_store %arg7[%c0_24, %c896], %64 {strides = array<i32>} : memref<8x1024xbf16, #tpu.memory_space<vmem>>, vector<8x128xbf16>,
    %c0_25 = arith.constant 0 : index
    %c0_26 = arith.constant 0 : index
    %66 = vector.load %arg7[%c0_25, %c0_26] : memref<8x1024xbf16, #tpu.memory_space<vmem>>, vector<8x640xbf16>
    %c0_27 = arith.constant 0 : index
    %c0_28 = arith.constant 0 : index
    %67 = vector.load %arg2[%c0_27, %c0_28] : memref<640x128xbf16, #tpu.memory_space<vmem>>, vector<640x128xbf16>
    %cst_29 = arith.constant dense<0.000000e+00> : vector<8x128xf32>
    %68 = tpu.matmul %66, %67, %cst_29 {dimension_numbers = #tpu.dot_dimension_numbers<[1], [0], [0], [1], [0, 0, 1, 1], [], []>} : vector<8x640xbf16>, vector<640x128xbf16>, vector<8x128xf32> -> vector<8x128xf32>
    %c0_30 = arith.constant 0 : index
    %c0_31 = arith.constant 0 : index
    %69 = vector.load %arg8[%c0_30, %c0_31] : memref<8x128xf32, #tpu.memory_space<vmem>>, vector<8x128xf32>
    tpu.vector_store %arg8[%c0_30, %c0_31], %68 {strides = array<i32>} : memref<8x128xf32, #tpu.memory_space<vmem>>, vector<8x128xf32>,
    %c0_32 = arith.constant 0 : index
    %c128_33 = arith.constant 128 : index
    %70 = vector.load %arg7[%c0_32, %c128_33] : memref<8x1024xbf16, #tpu.memory_space<vmem>>, vector<8x640xbf16>
    %c0_34 = arith.constant 0 : index
    %c0_35 = arith.constant 0 : index
    %71 = vector.load %arg2[%c0_34, %c0_35] : memref<640x128xbf16, #tpu.memory_space<vmem>>, vector<640x128xbf16>
    %cst_36 = arith.constant dense<0.000000e+00> : vector<8x128xf32>
    %72 = tpu.matmul %70, %71, %cst_36 {dimension_numbers = #tpu.dot_dimension_numbers<[1], [0], [0], [1], [0, 0, 1, 1], [], []>} : vector<8x640xbf16>, vector<640x128xbf16>, vector<8x128xf32> -> vector<8x128xf32>
    %c0_37 = arith.constant 0 : index
    %c0_38 = arith.constant 0 : index
    %73 = vector.load %arg8[%c0_37, %c0_38] : memref<8x128xf32, #tpu.memory_space<vmem>>, vector<8x128xf32>
    %74 = arith.maximumf %73, %72 : vector<8x128xf32>
    %c0_39 = arith.constant 0 : index
    %c0_40 = arith.constant 0 : index
    %75 = vector.load %arg8[%c0_39, %c0_40] : memref<8x128xf32, #tpu.memory_space<vmem>>, vector<8x128xf32>
    tpu.vector_store %arg8[%c0_39, %c0_40], %74 {strides = array<i32>} : memref<8x128xf32, #tpu.memory_space<vmem>>, vector<8x128xf32>,
    %c0_41 = arith.constant 0 : index
    %c256_42 = arith.constant 256 : index
    %76 = vector.load %arg7[%c0_41, %c256_42] : memref<8x1024xbf16, #tpu.memory_space<vmem>>, vector<8x640xbf16>
    %c0_43 = arith.constant 0 : index
    %c0_44 = arith.constant 0 : index
    %77 = vector.load %arg2[%c0_43, %c0_44] : memref<640x128xbf16, #tpu.memory_space<vmem>>, vector<640x128xbf16>
    %cst_45 = arith.constant dense<0.000000e+00> : vector<8x128xf32>
    %78 = tpu.matmul %76, %77, %cst_45 {dimension_numbers = #tpu.dot_dimension_numbers<[1], [0], [0], [1], [0, 0, 1, 1], [], []>} : vector<8x640xbf16>, vector<640x128xbf16>, vector<8x128xf32> -> vector<8x128xf32>
    %c0_46 = arith.constant 0 : index
    %c0_47 = arith.constant 0 : index
    %79 = vector.load %arg8[%c0_46, %c0_47] : memref<8x128xf32, #tpu.memory_space<vmem>>, vector<8x128xf32>
    %80 = arith.maximumf %79, %78 : vector<8x128xf32>
    %c0_48 = arith.constant 0 : index
    %c0_49 = arith.constant 0 : index
    %81 = vector.load %arg8[%c0_48, %c0_49] : memref<8x128xf32, #tpu.memory_space<vmem>>, vector<8x128xf32>
    tpu.vector_store %arg8[%c0_48, %c0_49], %80 {strides = array<i32>} : memref<8x128xf32, #tpu.memory_space<vmem>>, vector<8x128xf32>,
    %c0_50 = arith.constant 0 : index
    %c384_51 = arith.constant 384 : index
    %82 = vector.load %arg7[%c0_50, %c384_51] : memref<8x1024xbf16, #tpu.memory_space<vmem>>, vector<8x640xbf16>
    %c0_52 = arith.constant 0 : index
    %c0_53 = arith.constant 0 : index
    %83 = vector.load %arg2[%c0_52, %c0_53] : memref<640x128xbf16, #tpu.memory_space<vmem>>, vector<640x128xbf16>
    %cst_54 = arith.constant dense<0.000000e+00> : vector<8x128xf32>
    %84 = tpu.matmul %82, %83, %cst_54 {dimension_numbers = #tpu.dot_dimension_numbers<[1], [0], [0], [1], [0, 0, 1, 1], [], []>} : vector<8x640xbf16>, vector<640x128xbf16>, vector<8x128xf32> -> vector<8x128xf32>
    %c0_55 = arith.constant 0 : index
    %c0_56 = arith.constant 0 : index
    %85 = vector.load %arg8[%c0_55, %c0_56] : memref<8x128xf32, #tpu.memory_space<vmem>>, vector<8x128xf32>
    %86 = arith.maximumf %85, %84 : vector<8x128xf32>
    %c0_57 = arith.constant 0 : index
    %c0_58 = arith.constant 0 : index
    %87 = vector.load %arg8[%c0_57, %c0_58] : memref<8x128xf32, #tpu.memory_space<vmem>>, vector<8x128xf32>
    tpu.vector_store %arg8[%c0_57, %c0_58], %86 {strides = array<i32>} : memref<8x128xf32, #tpu.memory_space<vmem>>, vector<8x128xf32>,
    %c0_59 = arith.constant 0 : index
    %c0_60 = arith.constant 0 : index
    %88 = vector.load %arg8[%c0_59, %c0_60] : memref<8x128xf32, #tpu.memory_space<vmem>>, vector<8x128xf32>
    %c0_61 = arith.constant 0 : index
    %c0_62 = arith.constant 0 : index
    %89 = vector.load %arg3[%c0_61, %c0_62] : memref<1x128xf32, #tpu.memory_space<vmem>>, vector<1x128xf32>
    %90 = vector.broadcast %89 : vector<1x128xf32> to vector<8x128xf32>
    %91 = arith.addf %88, %90 : vector<8x128xf32>
    %cst_63 = arith.constant 0.000000e+00 : f32
    %92 = vector.broadcast %cst_63 : f32 to vector<8x128xf32>
    %93 = arith.maximumf %91, %92 : vector<8x128xf32>
    %94 = arith.truncf %93 : vector<8x128xf32> to vector<8x128xbf16>
    %c0_64 = arith.constant 0 : index
    %c0_65 = arith.constant 0 : index
    %95 = vector.load %arg4[%c0_64, %c0_65] : memref<128x256xbf16, #tpu.memory_space<vmem>>, vector<128x256xbf16>
    %cst_66 = arith.constant dense<0.000000e+00> : vector<8x256xf32>
    %96 = tpu.matmul %94, %95, %cst_66 {dimension_numbers = #tpu.dot_dimension_numbers<[1], [0], [0], [1], [0, 0, 1, 1], [], []>} : vector<8x128xbf16>, vector<128x256xbf16>, vector<8x256xf32> -> vector<8x256xf32>
    %c0_67 = arith.constant 0 : index
    %c0_68 = arith.constant 0 : index
    %97 = vector.load %arg5[%c0_67, %c0_68] : memref<1x256xf32, #tpu.memory_space<vmem>>, vector<1x256xf32>
    %98 = vector.broadcast %97 : vector<1x256xf32> to vector<8x256xf32>
    %99 = arith.addf %96, %98 : vector<8x256xf32>
    %100 = vector.extract_strided_slice %99 {offsets = [0, 0], sizes = [8, 128], strides = [1, 1]} : vector<8x256xf32> to vector<8x128xf32>
    %cst_69 = arith.constant 0.000000e+00 : f32
    %101 = vector.broadcast %cst_69 : f32 to vector<8x128xf32>
    %102 = arith.maximumf %100, %101 : vector<8x128xf32>
    %103 = vector.extract_strided_slice %99 {offsets = [0, 128], sizes = [8, 128], strides = [1, 1]} : vector<8x256xf32> to vector<8x128xf32>
    %104 = arith.negf %103 : vector<8x128xf32>
    %105 = math.exp %104 : vector<8x128xf32>
    %cst_70 = arith.constant 1.000000e+00 : f32
    %106 = vector.broadcast %cst_70 : f32 to vector<8x128xf32>
    %107 = arith.addf %106, %105 : vector<8x128xf32>
    %108 = arith.divf %106, %107 : vector<8x128xf32>
    %109 = arith.mulf %108, %102 : vector<8x128xf32>
    %cst_71 = arith.constant 1.000000e+00 : f32
    %110 = vector.broadcast %cst_71 : f32 to vector<8x128xf32>
    %111 = arith.subf %110, %108 : vector<8x128xf32>
    %112 = arith.mulf %111, %93 : vector<8x128xf32>
    %113 = arith.addf %109, %112 : vector<8x128xf32>
    %114 = arith.truncf %113 : vector<8x128xf32> to vector<8x128xbf16>
    %c0_72 = arith.constant 0 : index
    %c0_73 = arith.constant 0 : index
    %115 = vector.load %arg6[%c0_72, %c0_73] : memref<8x128xbf16, #tpu.memory_space<vmem>>, vector<8x128xbf16>
    tpu.vector_store %arg6[%c0_72, %c0_73], %114 {strides = array<i32>} : memref<8x128xbf16, #tpu.memory_space<vmem>>, vector<8x128xbf16>,
    return
  }
  func.func @transform_0(%arg0: i32) -> (i32, i32) {
    %c0_i32 = arith.constant 0 : i32
    %c0_i32_0 = arith.constant 0 : i32
    return %arg0, %c0_i32 : i32, i32
  }
  func.func @transform_1(%arg0: i32) -> (i32, i32) {
    %c0_i32 = arith.constant 0 : i32
    %c0_i32_0 = arith.constant 0 : i32
    %c0_i32_1 = arith.constant 0 : i32
    return %c0_i32, %c0_i32_0 : i32, i32
  }
  func.func @transform_2(%arg0: i32) -> (i32, i32) {
    %c0_i32 = arith.constant 0 : i32
    %c0_i32_0 = arith.constant 0 : i32
    %c0_i32_1 = arith.constant 0 : i32
    return %c0_i32, %c0_i32_0 : i32, i32
  }
  func.func @transform_3(%arg0: i32) -> (i32, i32) {
    %c0_i32 = arith.constant 0 : i32
    %c0_i32_0 = arith.constant 0 : i32
    %c0_i32_1 = arith.constant 0 : i32
    return %c0_i32, %c0_i32_0 : i32, i32
  }
  func.func @transform_4(%arg0: i32) -> (i32, i32) {
    %c0_i32 = arith.constant 0 : i32
    %c0_i32_0 = arith.constant 0 : i32
    %c0_i32_1 = arith.constant 0 : i32
    return %c0_i32, %c0_i32_0 : i32, i32
  }
  func.func @transform_5(%arg0: i32) -> (i32, i32) {
    %c0_i32 = arith.constant 0 : i32
    %c0_i32_0 = arith.constant 0 : i32
    return %arg0, %c0_i32 : i32, i32
  }
}

</mosaic_0001>

<bundles_post_ra>
// kernel: model_embeddings_forward.1
= control target key start
LH: loop header
LB: loop body
LE: loop exit
PB: predicated region body
PF: predicated region fallthrough
CT: control target
= control target key end

     0   :  { %10 = vsyncpa [#allocation5], 0  ;;  %s3694_s0 = inlined_call_operand.hbm [shape: s32[16,8], index: 0, kind: input, shape index: {}]   ;;  %s3695_s1 = inlined_call_operand.hbm [shape: bf16[640,128], index: 1, kind: input, shape index: {}]   ;;  %s3696_s2 = inlined_call_operand.vmem [shape: f32[1,128], index: 2, kind: input, shape index: {}]   ;;  %s3697_s3 = inlined_call_operand.hbm [shape: bf16[128,256], index: 3, kind: input, shape index: {}]   ;;  %s3698_s4 = inlined_call_operand.vmem [shape: f32[1,256], index: 4, kind: input, shape index: {}]   ;;  %s3699_s5 = inlined_call_operand.vmem [shape: bf16[16,128], index: 5, kind: output, shape index: {}]  }
   0x1   :  { %12 = vsyncpa [#allocation5 + $0x1], 0 }
   0x2   :  { %13 = vsyncpa [#allocation7], 0  ;;  %s3404_s18 = smov 0   ;;  %s3406_s19 = smov 0  }
   0x3   :  { %s3408_s20 = smov 0   ;;  %s3410_s21 = smov 0  }
   0x4 LB: > { %s3423_s22 = sadd.s32 4294967295, %s3355_s21   ;;  %p39_p0 = scmp.ne.s32.totalorder %s3347_s19, %s3343_s18  ;;  %s3355_s21 = sphi %s3410_s21, %s3714_s21   ;;  %s3351_s20 = sphi %s3408_s20, %s3713_s20   ;;  %s3347_s19 = sphi %s3406_s19, %s3712_s19   ;;  %s3343_s18 = sphi %s3404_s18, %s3711_s18  }
   0x5   : > { %p3700_p1 = scmp.eq.s32.totalorder %s3423_s22, 0  ;;  %p2441_p2 = scmp.ge.s32.totalorder %s3355_s21, 1 }
   0x6   : > { %p160_p3 = scmp.lt.s32.totalorder %s3355_s21, 3  ;;  %s3357_s25 = smov [#allocation6]  }
   0x7   : > { %p3431_p4 = por %p3700_p1, %p39_p0  ;;  %s172_s26 = sshll.u32 %s3357_s25, 4  ;;  %s173_s26 = int_to_ptr.vmem [resolvable:$true] %s172_s26 }
   0x8   : > { %p3435_p5 = pnand %p2441_p2, %p160_p3  ;;  %s3358_s28 = smov [#allocation8]  }
   0x9   : > { %s3703_s23 = scalar_select %p3431_p4, 1, 0 }
   0xa   : > { %s3704_s24 = scalar_select %p3435_p5, 1, 0 }
   0xb   : > { %p2954_p6 = pneg %p3435_p5  ;;  %s188_s29 = sshll.u32 %s3358_s28, 4  ;;  %s3447_s29 = int_to_ptr.vmem [resolvable:$true] %s188_s29 }
   0xc   : > { %s3231_s7 = scalar_lea.hbm %s3695_s1, 5120 }
   0xd   : > { %p3443_p7 = pnand %p2954_p6, %p3700_p1  ;;  %p3232_p8 = scmp.ne.s32.totalorder %s3695_s1, %s3231_s7 }
   0xe   : > { %p3238_p12 = scmp.lt.u32.totalorder %s3231_s7, %s3695_s1 }
   0xf   : > { %p3233_p9 = pneg %p3443_p7 }
  0x11   : > { %p3234_p10 = pnand %p3233_p9, %p3232_p8 }
  0x13   : > { %p3235_p11 = pneg %p3234_p10 }
  0x15   : > { %p3240_p13 = pnand %p3238_p12, %p3235_p11 }
  0x17   : > { %3243 = shalt.err (!%p3240_p13)
}
  0x18   : > { %s3244_s12 = scalar_lea.vmem %s173_s26, 5120  ;;  %p3252_p6 = scmp.lt.s32.totalorder %s173_s26, %s173_s26 }
  0x19   : > { %p3245_p0 = scmp.ne.s32.totalorder %s173_s26, %s3244_s12  ;;  %p3253_p1 = scmp.lt.s32.totalorder %s3244_s12, %s3244_s12 }
  0x1b   : > { %p3247_p2 = pnand %p3245_p0, %p3233_p9  ;;  %p3254_p4 = por %p3253_p1, %p3252_p6 }
  0x1d   : > { %p3248_p3 = pneg %p3247_p2 }
  0x1f   : > { %p3255_p5 = pnand %p3254_p4, %p3248_p3 }
  0x21   : > { %3258 = shalt.err (!%p3255_p5)
}
  0x22   : > { %s3359_s13 = smov 64   ;;  %s3360_s14 = smov 4  }
  0x23   : > { %2957 = dma.hbm_to_vmem [thread:$0]  (!%p3443_p7), %s3695_s1, 5120, %s173_s26, [#allocation7], %s3359_s13, %s3359_s13, %s3360_s14  }
  0x24   : > { %s3259_s25 = scalar_lea.hbm %s3697_s3, 2048 }
  0x25   : > { %p3260_p8 = scmp.ne.s32.totalorder %s3697_s3, %s3259_s25  ;;  %p3266_p5 = scmp.lt.u32.totalorder %s3259_s25, %s3697_s3 }
  0x27   : > { %p3262_p1 = pnand %p3260_p8, %p3233_p9 }
  0x29   : > { %p3263_p4 = pneg %p3262_p1 }
  0x2b   : > { %p3268_p10 = pnand %p3266_p5, %p3263_p4 }
  0x2d   : > { %3271 = shalt.err (!%p3268_p10)
}
  0x2e   : > { %s3272_s26 = scalar_lea.vmem %s3447_s29, 2048  ;;  %p3280_p0 = scmp.lt.s32.totalorder %s3447_s29, %s3447_s29 }
  0x2f   : > { %p3273_p11 = scmp.ne.s32.totalorder %s3447_s29, %s3272_s26  ;;  %p3281_p2 = scmp.lt.s32.totalorder %s3272_s26, %s3272_s26 }
  0x31   : > { %p3275_p12 = pnand %p3273_p11, %p3233_p9  ;;  %p3282_p3 = por %p3281_p2, %p3280_p0 }
  0x33   : > { %p3276_p13 = pneg %p3275_p12 }
  0x35   : > { %p3283_p6 = pnand %p3282_p3, %p3276_p13 }
  0x37   : > { %3286 = shalt.err (!%p3283_p6)
}
  0x38   : > { %s3361_s8 = smov 128   ;;  %s3362_s9 = smov 8  }
  0x39   : > { %2960 = dma.hbm_to_vmem [thread:$0]  (!%p3443_p7), %s3697_s3, 2048, %s3447_s29, [#allocation7], %s3361_s8, %s3361_s8, %s3362_s9  }
  0x3a   : > { %s3497_s12 = sadd.s32 1, %s3355_s21   ;;  %s26_s14 = sadd.s32 1, %s3351_s20 }
  0x3b   : > { %s23_s13 = ssub.s32 %s3355_s21, %s3497_s12  ;;  %p33_p8 = scmp.ne.s32.totalorder %s3351_s20, %s3347_s19 }
  0x3c   : > { %p24_p9 = scmp.eq.s32.totalorder %s23_s13, 0  ;;  %p34_p1 = scmp.eq.s32.totalorder %s3355_s21, 0 }
  0x3d   : > { %p2967_p5 = scmp.lt.s32.totalorder %s3355_s21, 2  ;;  %s205_s16 = sand.u32 1, %s3351_s20  }
  0x3e   : > { %s3506_s15 = scalar_select %p24_p9, %s3351_s20, %s26_s14  }
  0x3f   : > { %p35_p4 = por %p34_p1, %p33_p8  ;;  %s2446_s17 = sshll.u32 %s3355_s21, 7 }
  0x40   : > { %s2445_s18 = sshll.u32 %s205_s16, 3  ;;  %s3514_s28 = scalar_lea.hbm %s3694_s0, %s2446_s17 }
  0x41   : > { %s209_s29 = scalar_lea.vmem [#allocation4], %s2445_s18  ;;  %p3516_p7 = pnand %p2967_p5, %p35_p4 }
  0x42   : > { %s216_s30 = sshll.u32 %s209_s29, 4  ;;  %s206_s21 = scalar_lea.sflag [#allocation5], %s205_s16  ;;  %s3520_s30 = int_to_ptr.vmem [resolvable:$true] %s216_s30 }
  0x43   : > { %s3287_s7 = scalar_lea.hbm %s3514_s28, 128  ;;  %p3289_p11 = pneg %p3516_p7 }
  0x44   : > { %p3288_p10 = scmp.ne.s32.totalorder %s3514_s28, %s3287_s7  ;;  %s3292_s9 = scalar_lea.hbm %s3694_s0, 256 }
  0x45   : > { %p3293_p0 = scmp.lt.u32.totalorder %s3514_s28, %s3694_s0  ;;  %p3294_p2 = scmp.lt.u32.totalorder %s3292_s9, %s3287_s7 }
  0x46   : > { %p3290_p12 = pnand %p3289_p11, %p3288_p10  ;;  %p3296_p6 = scmp.lt.u32.totalorder %s3287_s7, %s3514_s28 }
  0x47   : > { %p3295_p3 = por %p3294_p2, %p3293_p0 }
  0x48   : > { %p3291_p13 = pneg %p3290_p12 }
  0x49   : > { %p3297_p9 = por %p3296_p6, %p3295_p3 }
  0x4b   : > { %p3298_p8 = pnand %p3297_p9, %p3291_p13 }
  0x4d   : > { %3301 = shalt.err (!%p3298_p8)
}
  0x4e   : > { %s3302_s13 = scalar_lea.vmem %s3520_s30, 128  ;;  %s3363_s14 = smov [#allocation4]  }
  0x4f   : > { %p3303_p1 = scmp.ne.s32.totalorder %s3520_s30, %s3302_s13  ;;  %s3307_s16 = sshll.u32 %s3363_s14, 4  ;;  %s3308_s16 = int_to_ptr.vmem [resolvable:$false] %s3307_s16 }
  0x50   : > { %s3309_s17 = scalar_lea.vmem %s3308_s16, 256  ;;  %p3310_p10 = scmp.lt.s32.totalorder %s3520_s30, %s3308_s16 }
  0x51   : > { %p3305_p4 = pnand %p3303_p1, %p3289_p11  ;;  %p3311_p12 = scmp.lt.s32.totalorder %s3309_s17, %s3302_s13 }
  0x53   : > { %p3306_p5 = pneg %p3305_p4  ;;  %p3312_p0 = por %p3311_p12, %p3310_p10 }
  0x55   : > { %p3313_p2 = pnand %p3312_p0, %p3306_p5 }
  0x57   : > { %3316 = shalt.err (!%p3313_p2)
}
  0x58   : > { %2964 = dma.hbm_to_vmem [thread:$0]  (!%p3516_p7), %s3514_s28, 128, %s3520_s30, %s206_s21  }
  0x59   : > { %p3707_p13 = scmp.ne.s32.totalorder %s3704_s24, 0 }
  0x5a   : > { %s227_s18 = sand.u32 (!%p3707_p13), 1, %s3347_s19   ;;  %p3708_p11 = scmp.ne.s32.totalorder (!%p3707_p13), %s3703_s23, 0 }
  0x5b   : > { %225 = sbr.rel (%p3707_p13) target bundleno = 889 (0x379), region = 40  ;;  %s2448_s27 = sshll.u32 (!%p3707_p13), %s227_s18, 3 }
  0x5c   : > { %s228_s25 = scalar_lea.sflag (!%p3707_p13), [#allocation5], %s227_s18  ;;  %s231_s29 = scalar_lea.vmem (!%p3707_p13), [#allocation4], %s2448_s27 }
  0x62   : > { %3334 = dma.done.wait (%p3708_p11), %s228_s25, 128  }
  0x63   : > { %3336 = vsyncadd (%p3708_p11), %s228_s25, 4294967168  ;;  %p3709_p3 = scmp.eq.s32.totalorder %s3423_s22, 0 }
  0x65   : > { %3338 = dma.done.wait (%p3709_p3), [#allocation7], 7168   ;;  %p3710_p6 = pmov %p3709_p3 }
  0x66   : > { %v3364_v0 = vmov 2   ;;  %v3365_v1 = vmov 0   ;;  %v3559_v2 = vld [vmem:[%s231_s29] sm:$0xff]  ;;  %v3027_v3 = vld [vmem:[#allocation6 + $0x40] sm:$0xff]   ;;  %v3366_v7 = vmov 3   ;;  %v3367_v8 = vmov 1  }
  0x67   : > { %3340 = vsyncadd (%p3710_p6), [#allocation7], 4294960128  ;;  %3020 = vset.pattern.permute.xlu1 %v3364_v0  ;;  %3018 = vset.pattern.permute.xlu0 %v3365_v1  ;;  %v3028_v4 = vld [vmem:[#allocation6 + $0xc0] sm:$0xff]   ;;  %v3031_v9 = vld [vmem:[#allocation6 + $0x48] sm:$0xff]   ;;  %v3368_v14 = vmov 4   ;;  %v3369_v15 = vmov 5   ;;  %v271_v43 = vlaneseq }
  0x68   : > { %288 = vperm.xlu1 %3020, %v3559_v2   ;;  %274 = vperm.xlu0 %3018, %v3559_v2   ;;  %v3029_v5 = vld [vmem:[#allocation6] sm:$0xff]   ;;  %v3032_v10 = vld [vmem:[#allocation6 + $0xc8] sm:$0xff]   ;;  %v3035_v13 = vld [vmem:[#allocation6 + $0x50] sm:$0xff]   ;;  %v3370_v21 = vmov 6   ;;  %v3371_v41 = vmov 0.0   ;;  %v3372_v42 = vmov 7  }
  0x69   : > { %2652 = vmatprep.subr.bf16.mxu0 %v3027_v3  ;;  %2674 = vmatprep.subr.bf16.mxu1 %v3028_v4  ;;  %v3030_v6 = vld [vmem:[#allocation6 + $0x80] sm:$0xff]   ;;  %v3033_v11 = vld [vmem:[#allocation6 + $0x8] sm:$0xff]   ;;  %v3036_v16 = vld [vmem:[#allocation6 + $0xd0] sm:$0xff]   ;;  %v3571_v44 = vand.u32 127, %v271_v43  ;;  %vm3373_vm7 = vmmov 0   ;;  %p265_p7 = scmp.lt.s32.totalorder %s3423_s22, 1 }
  0x6a   : > { %2653 = vmatpush3.bf16.msra.mxu0 %v3029_v5  ;;  %2675 = vmatpush3.bf16.msra.mxu1 %v3030_v6  ;;  %v3034_v12 = vld [vmem:[#allocation6 + $0x88] sm:$0xff]   ;;  %v3037_v17 = vld [vmem:[#allocation6 + $0x10] sm:$0xff]   ;;  %v3039_v19 = vld [vmem:[#allocation6 + $0x58] sm:$0xff]  }
  0x6b   : > { %2654 = vmatprep.subr.bf16.mxu0 %v3031_v9  ;;  %2676 = vmatprep.subr.bf16.mxu1 %v3032_v10  ;;  %v3038_v18 = vld [vmem:[#allocation6 + $0x90] sm:$0xff]   ;;  %v3040_v20 = vld [vmem:[#allocation6 + $0xd8] sm:$0xff]   ;;  %v3043_v24 = vld [vmem:[#allocation6 + $0x60] sm:$0xff]   ;;  %s3716_s22 = smov (!%p265_p7, %s3423_s22), 1 }
  0x6c   : > { %3021 = vset.pattern.permute.xlu1 %v3366_v7  ;;  %3019 = vset.pattern.permute.xlu0 %v3367_v8  ;;  %v3041_v22 = vld [vmem:[#allocation6 + $0x18] sm:$0xff]   ;;  %v3044_v25 = vld [vmem:[#allocation6 + $0xe0] sm:$0xff]   ;;  %v3047_v28 = vld [vmem:[#allocation6 + $0x68] sm:$0xff]   ;;  %s2451_s6 = sshll.u32 %s3716_s22, 2 }
  0x6d   : > { %295 = vperm.xlu1 %3021, %v3559_v2   ;;  %281 = vperm.xlu0 %3019, %v3559_v2   ;;  %v3042_v23 = vld [vmem:[#allocation6 + $0x98] sm:$0xff]   ;;  %v3045_v26 = vld [vmem:[#allocation6 + $0x20] sm:$0xff]   ;;  %v3048_v29 = vld [vmem:[#allocation6 + $0xe8] sm:$0xff]   ;;  %s268_s26 = scalar_lea.vmem %s3699_s5, %s2451_s6 }
  0x6e   : > { %2655 = vmatpush3.bf16.msra.mxu0 %v3033_v11  ;;  %2677 = vmatpush3.bf16.msra.mxu1 %v3034_v12  ;;  %v3046_v27 = vld [vmem:[#allocation6 + $0xa0] sm:$0xff]   ;;  %v3049_v30 = vld [vmem:[#allocation6 + $0x28] sm:$0xff]   ;;  %v3051_v32 = vld [vmem:[#allocation6 + $0x70] sm:$0xff]  }
  0x6f   : > { %2656 = vmatprep.subr.bf16.mxu0 %v3035_v13  ;;  %2678 = vmatprep.subr.bf16.mxu1 %v3036_v16  ;;  %v3050_v31 = vld [vmem:[#allocation6 + $0xa8] sm:$0xff]   ;;  %v3052_v33 = vld [vmem:[#allocation6 + $0xf0] sm:$0xff]   ;;  %v3055_v36 = vld [vmem:[#allocation6 + $0x78] sm:$0xff]  }
  0x70   : > { %v3053_v34 = vld [vmem:[#allocation6 + $0x30] sm:$0xff]   ;;  %v3056_v37 = vld [vmem:[#allocation6 + $0xf8] sm:$0xff]   ;;  %v3063_v40 = vld [vmem:[#allocation6 + $0x40] sm:$0xff]  }
  0x71   : > { %3022 = vset.pattern.permute.xlu1 %v3368_v14  ;;  %3023 = vset.pattern.permute.xlu0 %v3369_v15  ;;  %v3054_v35 = vld [vmem:[#allocation6 + $0xb0] sm:$0xff]   ;;  %v3057_v38 = vld [vmem:[#allocation6 + $0x38] sm:$0xff]   ;;  %v3064_v0 = vld [vmem:[#allocation6 + $0x100] sm:$0xff]  }
  0x72   : > { %302 = vperm.xlu1 %3022, %v3559_v2   ;;  %309 = vperm.xlu0 %3023, %v3559_v2   ;;  %v3058_v39 = vld [vmem:[#allocation6 + $0xb8] sm:$0xff]   ;;  %v3065_v4 = vld [vmem:[#allocation6] sm:$0xff]   ;;  %v3068_v11 = vld [vmem:[#allocation6 + $0x48] sm:$0xff]  }
  0x73   : > { %2657 = vmatpush3.bf16.msra.mxu0 %v3037_v17  ;;  %2679 = vmatpush3.bf16.msra.mxu1 %v3038_v18  ;;  %v3069_v14 = vld [vmem:[#allocation6 + $0x108] sm:$0xff]   ;;  %v3071_v16 = vld [vmem:[#allocation6 + $0x50] sm:$0xff]  }
  0x74   : > { %2658 = vmatprep.subr.bf16.mxu0 %v3039_v19  ;;  %2680 = vmatprep.subr.bf16.mxu1 %v3040_v20  ;;  %v3070_v15 = vld [vmem:[#allocation6 + $0x8] sm:$0xff]   ;;  %v3072_v17 = vld [vmem:[#allocation6 + $0x110] sm:$0xff]   ;;  %v3074_v19 = vld [vmem:[#allocation6 + $0x58] sm:$0xff]  }
  0x75   : > { %v3073_v18 = vld [vmem:[#allocation6 + $0x10] sm:$0xff]   ;;  %v3075_v20 = vld [vmem:[#allocation6 + $0x118] sm:$0xff]  }
  0x76   : > { %3024 = vset.pattern.permute.xlu1 %v3370_v21  ;;  %3026 = vset.pattern.permute.xlu0 %v3372_v42  ;;  %v3076_v21 = vld [vmem:[#allocation6 + $0x18] sm:$0xff]  }
  0x77   : > { %316 = vperm.xlu1 %3024, %v3559_v2   ;;  %2659 = vmatpush3.bf16.msra.mxu0 %v3041_v22  ;;  %v3077_v22 = vld [vmem:[#allocation6 + $0x60] sm:$0xff]  }
  0x78   : > { %2681 = vmatpush3.bf16.msra.mxu1 %v3042_v23  ;;  %2660 = vmatprep.subr.bf16.mxu0 %v3043_v24  ;;  %v3078_v23 = vld [vmem:[#allocation6 + $0x120] sm:$0xff]  }
  0x79   : > { %2682 = vmatprep.subr.bf16.mxu1 %v3044_v25  ;;  %v3079_v24 = vld [vmem:[#allocation6 + $0x20] sm:$0xff]   ;;  %v3080_v25 = vld [vmem:[#allocation6 + $0x68] sm:$0xff]  }
  0x7b   : > { %2661 = vmatpush3.bf16.msra.mxu0 %v3045_v26  ;;  %3025 = vset.pattern.permute.xlu1 %v3372_v42  ;;  %v3081_v26 = vld [vmem:[#allocation6 + $0x128] sm:$0xff]  }
  0x7c   : > { %2683 = vmatpush3.bf16.msra.mxu1 %v3046_v27  ;;  %2662 = vmatprep.subr.bf16.mxu0 %v3047_v28  ;;  %v3082_v27 = vld [vmem:[#allocation6 + $0x28] sm:$0xff]   ;;  %v3083_v28 = vld [vmem:[#allocation6 + $0x70] sm:$0xff]  }
  0x7d   : > { %2684 = vmatprep.subr.bf16.mxu1 %v3048_v29  ;;  %323 = vperm.xlu1 %3025, %v3559_v2  }
  0x7f   : > { %2663 = vmatpush3.bf16.msra.mxu0 %v3049_v30 }
  0x80   : > { %2685 = vmatpush3.bf16.msra.mxu1 %v3050_v31  ;;  %2664 = vmatprep.subr.bf16.mxu0 %v3051_v32  ;;  %v3084_v31 = vld [vmem:[#allocation6 + $0x130] sm:$0xff]  }
  0x81   : > { %2686 = vmatprep.subr.bf16.mxu1 %v3052_v33  ;;  %v3085_v32 = vld [vmem:[#allocation6 + $0x30] sm:$0xff]  }
  0x83   : > { %2665 = vmatpush3.bf16.msra.mxu0 %v3053_v34  ;;  %v3086_v34 = vld [vmem:[#allocation6 + $0x78] sm:$0xff]  }
  0x84   : > { %2687 = vmatpush3.bf16.msra.mxu1 %v3054_v35  ;;  %2666 = vmatprep.subr.bf16.mxu0 %v3055_v36  ;;  %v3087_v35 = vld [vmem:[#allocation6 + $0x138] sm:$0xff]  }
  0x85   : > { %2688 = vmatprep.subr.bf16.mxu1 %v3056_v37  ;;  %v3088_v36 = vld [vmem:[#allocation6 + $0x38] sm:$0xff]   ;;  %v3090_v37 = vld [vmem:[#allocation6 + $0xc0] sm:$0xff]  }
  0x87   : > { %2667 = vmatpush3.bf16.msra.mxu0 %v3057_v38 }
  0x88   : > { %2689 = vmatpush3.bf16.msra.mxu1 %v3058_v39  ;;  %2864 = vmatprep.subr.bf16.mxu0 %v3371_v41 }
  0x89   : > { %2705 = vmatprep.subr.bf16.mxu1 %v3063_v40  ;;  %v3091_v40 = vld [vmem:[#allocation6 + $0x80] sm:$0xff]  }
  0xe7   : > { %v275_v45 = vpop.permute.xlu0 %274  ;;  %v289_v46 = vpop.permute.xlu1 %288 }
  0xe8   : > { %vm276_vm0 = vcmp.eq.s32.totalorder %v275_v45, %v3571_v44  ;;  %vm290_vm1 = vcmp.eq.s32.totalorder %v289_v46, %v3571_v44  ;;  %v3095_v45 = vld [vmem:[#allocation6 + $0xc8] sm:$0xff]  }
  0xe9   : > { %v277_v47 = vsel %vm276_vm0, 1.0, %v3371_v41  ;;  %v291_v48 = vsel %vm290_vm1, 1.0, %v3371_v41 }
  0xea   : > { %v278_v49 = vpack.c.bf16 %v277_v47, %v277_v47  ;;  %v292_v50 = vpack.c.bf16 %v291_v48, %v291_v48  ;;  %v3096_v47 = vld [vmem:[#allocation6 + $0x88] sm:$0xff]  }
  0xeb   : > { %v3097_v48 = vld [vmem:[#allocation6 + $0x108] sm:$0xff]  }
  0xec   : > { %279 = vst [vmem:[#allocation2] sm:$0xf] %v278_v49  ;;  %293 = vst [vmem:[#allocation2 + $0x8] sm:$0xf] %v292_v50  ;;  %v296_v51 = vpop.permute.xlu1 %295  ;;  %v282_v52 = vpop.permute.xlu0 %281  ;;  %v3098_v49 = vld [vmem:[#allocation6 + $0xd0] sm:$0xff]  }
  0xed   : > { %vm297_vm2 = vcmp.eq.s32.totalorder %v296_v51, %v3571_v44  ;;  %vm283_vm3 = vcmp.eq.s32.totalorder %v282_v52, %v3571_v44  ;;  %v3099_v50 = vld [vmem:[#allocation6 + $0x90] sm:$0xff]   ;;  %v3101_v52 = vld [vmem:[#allocation6 + $0xd8] sm:$0xff]  }
  0xee   : > { %v298_v53 = vsel %vm297_vm2, 1.0, %v3371_v41  ;;  %v284_v54 = vsel %vm283_vm3, 1.0, %v3371_v41  ;;  %v3100_v51 = vld [vmem:[#allocation6 + $0x110] sm:$0xff]  }
  0xef   : > { %v299_v55 = vpack.c.bf16 %v298_v53, %v298_v53  ;;  %v285_v56 = vpack.c.bf16 %v284_v54, %v284_v54  ;;  %v3102_v53 = vld [vmem:[#allocation6 + $0x98] sm:$0xff]  }
  0xf0   : > { %v3103_v54 = vld [vmem:[#allocation6 + $0x118] sm:$0xff]  }
  0xf1   : > { %300 = vst [vmem:[#allocation2 + $0xc] sm:$0xf] %v299_v55  ;;  %286 = vst [vmem:[#allocation2 + $0x4] sm:$0xf] %v285_v56  ;;  %v303_v57 = vpop.permute.xlu1 %302  ;;  %v310_v58 = vpop.permute.xlu0 %309  ;;  %v3104_v55 = vld [vmem:[#allocation6 + $0xe0] sm:$0xff]  }
  0xf2   : > { %vm304_vm4 = vcmp.eq.s32.totalorder %v303_v57, %v3571_v44  ;;  %vm311_vm5 = vcmp.eq.s32.totalorder %v310_v58, %v3571_v44  ;;  %v3105_v56 = vld [vmem:[#allocation6 + $0xa0] sm:$0xff]   ;;  %v3107_v58 = vld [vmem:[#allocation6 + $0xe8] sm:$0xff]  }
  0xf3   : > { %v305_v59 = vsel %vm304_vm4, 1.0, %v3371_v41  ;;  %v312_v60 = vsel %vm311_vm5, 1.0, %v3371_v41  ;;  %v3106_v57 = vld [vmem:[#allocation6 + $0x120] sm:$0xff]  }
  0xf4   : > { %v306_v61 = vpack.c.bf16 %v305_v59, %v305_v59  ;;  %v313_v62 = vpack.c.bf16 %v312_v60, %v312_v60  ;;  %v3108_v59 = vld [vmem:[#allocation6 + $0xa8] sm:$0xff]  }
  0xf5   : > { %v3109_v60 = vld [vmem:[#allocation6 + $0x128] sm:$0xff]  }
  0xf6   : > { %307 = vst [vmem:[#allocation2 + $0x10] sm:$0xf] %v306_v61  ;;  %314 = vst [vmem:[#allocation2 + $0x14] sm:$0xf] %v313_v62  ;;  %v317_v63 = vpop.permute.xlu1 %316  ;;  %v3110_v61 = vld [vmem:[#allocation6 + $0xf0] sm:$0xff]  }
  0xf7   : > { %vm318_vm6 = vcmp.eq.s32.totalorder %v317_v63, %v3571_v44  ;;  %v3111_v62 = vld [vmem:[#allocation6 + $0xb0] sm:$0xff]  }
  0xf8   : > { %v329_v2 = vld [vmem:[#allocation2] sm:$0xff]  ;;  %v330_v3 = vld [vmem:[#allocation2 + $0x8] sm:$0xff]  ;;  %v319_v5 = vsel %vm318_vm6, 1.0, %v3371_v41 }
  0xf9   : > { %v2452_v6 = vcombine.low %v329_v2, %v329_v2  ;;  %v2453_v7 = vcombine.high %v329_v2, %v329_v2  ;;  %v3587_v8 = vcombine.low %v330_v3, %v330_v3  ;;  %v3589_v9 = vcombine.high %v330_v3, %v330_v3  ;;  %v3591_v10 = vld [vmem:[#allocation2 + $0x4] sm:$0xff] }
  0xfa   : > { %v320_v12 = vpack.c.bf16 %v319_v5, %v319_v5  ;;  %v2498_v13 = vcombine.high %v3591_v10, %v3591_v10  ;;  %v2497_v42 = vcombine.low %v3591_v10, %v3591_v10  ;;  %v3112_v63 = vld [vmem:[#allocation6 + $0x130] sm:$0xff]   ;;  %v3114_v2 = vld [vmem:[#allocation6 + $0xb8] sm:$0xff]   ;;  %v3118_v5 = vld [vmem:[#allocation6 + $0xc0] sm:$0xff]  }
  0xfb   : > { %702 = vmatprep.mubr.bf16.mxu0 %v2453_v7  ;;  %742 = vmatprep.mubr.bf16.mxu1 %v3589_v9  ;;  %v3115_v3 = vld [vmem:[#allocation6 + $0x138] sm:$0xff]   ;;  %v3119_v7 = vld [vmem:[#allocation6] sm:$0xff]  }
  0xfc   : > { %703 = vmatmul.mubr.bf16.vlgmr.msra.gmra.mrb[0].mxu0 %v2452_v6  ;;  %743 = vmatmul.mubr.bf16.vlgmr.msra.gmra.mrb[0].mxu1 %v3587_v8  ;;  %321 = vst [vmem:[#allocation2 + $0x18] sm:$0xf] %v320_v12  ;;  %v324_v29 = vpop.permute.xlu1 %323 }
  0xfd   : > { %2865 = vmatpush3.bf16.msra.mxu0 %v3064_v0  ;;  %2706 = vmatpush3.bf16.msra.mxu1 %v3065_v4  ;;  %vm325_vm8 = vcmp.eq.s32.totalorder %v324_v29, %v3571_v44  ;;  %v3089_v38 = vld [vmem:[#allocation2 + $0x10] ss:$0 sps:$4 sm:$0xff]   ;;  %v3113_v0 = vld [vmem:[#allocation6 + $0xf8] sm:$0xff]   ;;  %v3116_v6 = vld [vmem:[#allocation2 + $0x14] ss:$0 sps:$4 sm:$0xff]  }
  0xfe   : > { %1164 = vmatprep.mubr.bf16.mxu1 %v2498_v13  ;;  %2866 = vmatprep.subr.bf16.mxu0 %v3371_v41  ;;  %v326_v30 = vsel %vm325_vm8, 1.0, %v3371_v41  ;;  %v3608_v39 = vld [vmem:[#allocation2 + $0xc] sm:$0xff]  ;;  %v3123_v13 = vld [vmem:[#allocation6 + $0x48] sm:$0xff]  }
  0xff   : > { %2707 = vmatprep.subr.bf16.mxu1 %v3068_v11  ;;  %2880 = vmatprep.mubr.msk.bf16.mxu0 %vm3373_vm7, %v3371_v41  ;;  %v327_v33 = vpack.c.bf16 %v326_v30, %v326_v30  ;;  %v3094_v44 = vld [vmem:[#allocation6 + $0x100] sm:$0xff]   ;;  %v3615_v46 = vcombine.high %v3608_v39, %v3608_v39  ;;  %v3629_v10 = vcombine.low %v3608_v39, %v3608_v39  ;;  %v3139_v29 = vld [vmem:[#allocation6 + $0x68] sm:$0xff]   ;;  %v3149_v39 = vld [vmem:[#allocation6 + $0x38] sm:$0xff]  }
 0x100   : > { %v3117_v4 = vld [vmem:[#allocation6 + $0x40] sm:$0xff]   ;;  %v3140_v30 = vld [vmem:[#allocation6 + $0xe8] sm:$0xff]  }
 0x101   : > { %2867 = vmatpush3.bf16.msra.mxu0 %v3069_v14  ;;  %2708 = vmatpush3.bf16.msra.mxu1 %v3070_v15  ;;  %328 = vst [vmem:[#allocation2 + $0x1c] sm:$0xf] %v327_v33  ;;  %v3120_v11 = vld [vmem:[#allocation6 + $0x80] sm:$0xff]   ;;  %v3124_v14 = vld [vmem:[#allocation6 + $0xc8] sm:$0xff]   ;;  %v3143_v33 = vld [vmem:[#allocation6 + $0x70] sm:$0xff]  }
 0x102   : > { %2868 = vmatprep.subr.bf16.mxu0 %v3371_v41  ;;  %2709 = vmatprep.subr.bf16.mxu1 %v3071_v16  ;;  %v3631_v12 = vld [vmem:[#allocation2 + $0x10] sm:$0xff]  ;;  %v3125_v16 = vld [vmem:[#allocation6 + $0x8] sm:$0xff]  }
 0x103   : > { %v2545_v15 = vcombine.high %v3631_v12, %v3631_v12 }
 0x105   : > { %2869 = vmatpush3.bf16.msra.mxu0 %v3072_v17  ;;  %2710 = vmatpush3.bf16.msra.mxu1 %v3073_v18  ;;  %v3126_v17 = vld [vmem:[#allocation6 + $0x88] sm:$0xff]   ;;  %v3127_v18 = vld [vmem:[#allocation6 + $0x50] sm:$0xff]  }
 0x106   : > { %2870 = vmatprep.subr.bf16.mxu0 %v3371_v41  ;;  %2711 = vmatprep.subr.bf16.mxu1 %v3074_v19  ;;  %v3128_v19 = vld [vmem:[#allocation6 + $0xd0] sm:$0xff]  }
 0x109   : > { %2871 = vmatpush3.bf16.msra.mxu0 %v3075_v20  ;;  %2712 = vmatpush3.bf16.msra.mxu1 %v3076_v21  ;;  %v3129_v20 = vld [vmem:[#allocation6 + $0x10] sm:$0xff]  }
 0x10a   : > { %2872 = vmatprep.subr.bf16.mxu0 %v3371_v41  ;;  %2713 = vmatprep.subr.bf16.mxu1 %v3077_v22  ;;  %v3130_v21 = vld [vmem:[#allocation6 + $0x90] sm:$0xff]   ;;  %v3131_v22 = vld [vmem:[#allocation6 + $0x58] sm:$0xff]  }
 0x10d   : > { %2873 = vmatpush3.bf16.msra.mxu0 %v3078_v23  ;;  %2714 = vmatpush3.bf16.msra.mxu1 %v3079_v24  ;;  %v3132_v23 = vld [vmem:[#allocation6 + $0xd8] sm:$0xff]  }
 0x10e   : > { %2874 = vmatprep.subr.bf16.mxu0 %v3371_v41  ;;  %2715 = vmatprep.subr.bf16.mxu1 %v3080_v25  ;;  %v3133_v24 = vld [vmem:[#allocation6 + $0x18] sm:$0xff]   ;;  %v3135_v25 = vld [vmem:[#allocation6 + $0x60] sm:$0xff]  }
 0x111   : > { %2875 = vmatpush3.bf16.msra.mxu0 %v3081_v26  ;;  %2716 = vmatpush3.bf16.msra.mxu1 %v3082_v27  ;;  %v3136_v26 = vld [vmem:[#allocation6 + $0xe0] sm:$0xff]  }
 0x112   : > { %2876 = vmatprep.subr.bf16.mxu0 %v3371_v41  ;;  %2717 = vmatprep.subr.bf16.mxu1 %v3083_v28  ;;  %v3137_v27 = vld [vmem:[#allocation6 + $0x20] sm:$0xff]  }
 0x113   : > { %v3138_v28 = vld [vmem:[#allocation6 + $0xa0] sm:$0xff]  }
 0x115   : > { %2877 = vmatpush3.bf16.msra.mxu0 %v3084_v31  ;;  %2718 = vmatpush3.bf16.msra.mxu1 %v3085_v32  ;;  %v3141_v31 = vld [vmem:[#allocation6 + $0x28] sm:$0xff]  }
 0x116   : > { %2878 = vmatprep.subr.bf16.mxu0 %v3371_v41  ;;  %2719 = vmatprep.subr.bf16.mxu1 %v3086_v34  ;;  %v3142_v32 = vld [vmem:[#allocation6 + $0xa8] sm:$0xff]   ;;  %v3144_v34 = vld [vmem:[#allocation6 + $0xf0] sm:$0xff]  }
 0x119   : > { %2879 = vmatpush3.bf16.msra.mxu0 %v3087_v35  ;;  %2720 = vmatpush3.bf16.msra.mxu1 %v3088_v36  ;;  %v3145_v35 = vld [vmem:[#allocation6 + $0x30] sm:$0xff]  }
 0x11a   : > { %2727 = vmatprep.subr.bf16.mxu0 %v3090_v37  ;;  %2884 = vmatprep.subr.bf16.mxu1 %v3371_v41  ;;  %v3146_v36 = vld [vmem:[#allocation6 + $0xb0] sm:$0xff]   ;;  %v3147_v37 = vld [vmem:[#allocation6 + $0x78] sm:$0xff]  }
 0x11c   : > { %2881 = vmatmul.mubr.bf16.vlgmr.msra.gmra.mrb[4].mxu0 %v3089_v38  ;;  %1165 = vmatmul.mubr.bf16.vlgmr.msra.gmra.mrb[4].mxu1 %v2497_v42  ;;  %v3148_v38 = vld [vmem:[#allocation6 + $0xf8] sm:$0xff]   ;;  %v3151_v42 = vld [vmem:[#allocation6 + $0x40] sm:$0xff]  }
 0x11d   : > { %2728 = vmatpush3.bf16.msra.mxu0 %v3091_v40  ;;  %1204 = vmatprep.mubr.bf16.mxu0 %v3615_v46  ;;  %v3150_v40 = vld [vmem:[#allocation6 + $0xb8] sm:$0xff]  }
 0x11e   : > { %2885 = vmatpush3.bf16.msra.mxu1 %v3094_v44  ;;  %2729 = vmatprep.subr.bf16.mxu0 %v3095_v45  ;;  %v3152_v44 = vld [vmem:[#allocation6 + $0x100] sm:$0xff]  }
 0x11f   : > { %2886 = vmatprep.subr.bf16.mxu1 %v3371_v41  ;;  %2900 = vmatprep.mubr.msk.bf16.mxu1 %vm3373_vm7, %v3371_v41  ;;  %v3153_v45 = vld [vmem:[#allocation6] sm:$0xff]  }
 0x121   : > { %2730 = vmatpush3.bf16.msra.mxu0 %v3096_v47  ;;  %v2544_v47 = vcombine.low %v3631_v12, %v3631_v12  ;;  %v3181_v12 = vld [vmem:[#allocation6 + $0xc8] sm:$0xff]  }
 0x122   : > { %2887 = vmatpush3.bf16.msra.mxu1 %v3097_v48  ;;  %2731 = vmatprep.subr.bf16.mxu0 %v3098_v49  ;;  %v3154_v48 = vld [vmem:[#allocation6 + $0x48] sm:$0xff]  }
 0x123   : > { %2888 = vmatprep.subr.bf16.mxu1 %v3371_v41  ;;  %v3155_v49 = vld [vmem:[#allocation6 + $0x108] sm:$0xff]  }
 0x125   : > { %2732 = vmatpush3.bf16.msra.mxu0 %v3099_v50  ;;  %v3156_v50 = vld [vmem:[#allocation6 + $0x8] sm:$0xff]  }
 0x126   : > { %2889 = vmatpush3.bf16.msra.mxu1 %v3100_v51  ;;  %2733 = vmatprep.subr.bf16.mxu0 %v3101_v52  ;;  %v3157_v51 = vld [vmem:[#allocation6 + $0x50] sm:$0xff]  }
 0x127   : > { %2890 = vmatprep.subr.bf16.mxu1 %v3371_v41  ;;  %v3158_v52 = vld [vmem:[#allocation6 + $0x110] sm:$0xff]  }
 0x129   : > { %2734 = vmatpush3.bf16.msra.mxu0 %v3102_v53  ;;  %v3160_v53 = vld [vmem:[#allocation6 + $0x58] sm:$0xff]  }
 0x12a   : > { %2891 = vmatpush3.bf16.msra.mxu1 %v3103_v54  ;;  %2735 = vmatprep.subr.bf16.mxu0 %v3104_v55  ;;  %v3161_v54 = vld [vmem:[#allocation6 + $0x118] sm:$0xff]   ;;  %v3163_v55 = vld [vmem:[#allocation6 + $0x60] sm:$0xff]  }
 0x12b   : > { %2892 = vmatprep.subr.bf16.mxu1 %v3371_v41 }
 0x12d   : > { %2736 = vmatpush3.bf16.msra.mxu0 %v3105_v56  ;;  %v3164_v56 = vld [vmem:[#allocation6 + $0x120] sm:$0xff]  }
 0x12e   : > { %2893 = vmatpush3.bf16.msra.mxu1 %v3106_v57  ;;  %2737 = vmatprep.subr.bf16.mxu0 %v3107_v58  ;;  %v3165_v57 = vld [vmem:[#allocation6 + $0x20] sm:$0xff]   ;;  %v3166_v58 = vld [vmem:[#allocation6 + $0x68] sm:$0xff]  }
 0x12f   : > { %2894 = vmatprep.subr.bf16.mxu1 %v3371_v41 }
 0x131   : > { %2738 = vmatpush3.bf16.msra.mxu0 %v3108_v59  ;;  %v3167_v59 = vld [vmem:[#allocation6 + $0x128] sm:$0xff]  }
 0x132   : > { %2895 = vmatpush3.bf16.msra.mxu1 %v3109_v60  ;;  %2739 = vmatprep.subr.bf16.mxu0 %v3110_v61  ;;  %v3168_v60 = vld [vmem:[#allocation6 + $0x28] sm:$0xff]   ;;  %v3169_v61 = vld [vmem:[#allocation6 + $0x70] sm:$0xff]  }
 0x133   : > { %2896 = vmatprep.subr.bf16.mxu1 %v3371_v41 }
 0x135   : > { %2740 = vmatpush3.bf16.msra.mxu0 %v3111_v62  ;;  %v3170_v62 = vld [vmem:[#allocation6 + $0x130] sm:$0xff]  }
 0x136   : > { %2897 = vmatpush3.bf16.msra.mxu1 %v3112_v63  ;;  %2741 = vmatprep.subr.bf16.mxu0 %v3113_v0  ;;  %v3171_v63 = vld [vmem:[#allocation6 + $0x30] sm:$0xff]   ;;  %v3172_v0 = vld [vmem:[#allocation6 + $0x78] sm:$0xff]  }
 0x137   : > { %2898 = vmatprep.subr.bf16.mxu1 %v3371_v41 }
 0x139   : > { %2742 = vmatpush3.bf16.msra.mxu0 %v3114_v2  ;;  %v3173_v2 = vld [vmem:[#allocation6 + $0x138] sm:$0xff]  }
 0x13a   : > { %2899 = vmatpush3.bf16.msra.mxu1 %v3115_v3  ;;  %2758 = vmatprep.subr.bf16.mxu0 %v3117_v4  ;;  %v3174_v3 = vld [vmem:[#allocation6 + $0x38] sm:$0xff]   ;;  %v3176_v4 = vld [vmem:[#allocation6 + $0xc0] sm:$0xff]  }
 0x13b   : > { %2780 = vmatprep.subr.bf16.mxu1 %v3118_v5  ;;  %v3175_v5 = vld [vmem:[#allocation2 + $0x18] ss:$0 sps:$4 sm:$0xff]  }
 0x13c   : > { %1205 = vmatmul.mubr.bf16.vlgmr.msra.gmra.mrb[8].mxu0 %v3629_v10 }
 0x13d   : > { %2901 = vmatmul.mubr.bf16.vlgmr.msra.gmra.mrb[8].mxu1 %v3116_v6  ;;  %2759 = vmatpush3.bf16.msra.mxu0 %v3119_v7  ;;  %v3177_v6 = vld [vmem:[#allocation6 + $0x80] sm:$0xff]  }
 0x13e   : > { %1628 = vmatprep.mubr.bf16.mxu0 %v3589_v9  ;;  %2781 = vmatpush3.bf16.msra.mxu1 %v3120_v11  ;;  %v3134_v9 = vld [vmem:[#allocation6 + $0x98] sm:$0xff]   ;;  %v3651_v7 = vld [vmem:[#allocation2 + $0x14] sm:$0xff] }
 0x13f   : > { %1668 = vmatprep.mubr.bf16.mxu1 %v2545_v15  ;;  %2760 = vmatprep.subr.bf16.mxu0 %v3123_v13  ;;  %v3180_v11 = vld [vmem:[#allocation6 + $0x100] sm:$0xff]   ;;  %v2590_v13 = vcombine.high %v3651_v7, %v3651_v7  ;;  %v3183_v15 = vld [vmem:[#allocation6 + $0x108] sm:$0xff]  }
 0x140   : > { %2782 = vmatprep.subr.bf16.mxu1 %v3124_v14  ;;  %v3182_v14 = vld [vmem:[#allocation6 + $0x88] sm:$0xff]  }
 0x141   : > { %2761 = vmatpush3.bf16.msra.mxu0 %v3125_v16  ;;  %v3184_v16 = vld [vmem:[#allocation6 + $0xd0] sm:$0xff]  }
 0x142   : > { %2783 = vmatpush3.bf16.msra.mxu1 %v3126_v17  ;;  %2762 = vmatprep.subr.bf16.mxu0 %v3127_v18  ;;  %v3185_v17 = vld [vmem:[#allocation6 + $0x90] sm:$0xff]  }
 0x143   : > { %2784 = vmatprep.subr.bf16.mxu1 %v3128_v19  ;;  %v3186_v18 = vld [vmem:[#allocation6 + $0x110] sm:$0xff]   ;;  %v3187_v19 = vld [vmem:[#allocation6 + $0xd8] sm:$0xff]  }
 0x145   : > { %2763 = vmatpush3.bf16.msra.mxu0 %v3129_v20  ;;  %v3189_v20 = vld [vmem:[#allocation6 + $0x118] sm:$0xff]  }
 0x146   : > { %2785 = vmatpush3.bf16.msra.mxu1 %v3130_v21  ;;  %2764 = vmatprep.subr.bf16.mxu0 %v3131_v22  ;;  %v3190_v21 = vld [vmem:[#allocation6 + $0xe0] sm:$0xff]  }
 0x147   : > { %2786 = vmatprep.subr.bf16.mxu1 %v3132_v23  ;;  %v3191_v22 = vld [vmem:[#allocation6 + $0xa0] sm:$0xff]  }
 0x148   : > { %v3192_v23 = vld [vmem:[#allocation6 + $0x120] sm:$0xff]  }
 0x149   : > { %2765 = vmatpush3.bf16.msra.mxu0 %v3133_v24  ;;  %v3193_v24 = vld [vmem:[#allocation6 + $0xe8] sm:$0xff]  }
 0x14a   : > { %2787 = vmatpush3.bf16.msra.mxu1 %v3134_v9  ;;  %2766 = vmatprep.subr.bf16.mxu0 %v3135_v25  ;;  %v3194_v9 = vld [vmem:[#allocation6 + $0xa8] sm:$0xff]  }
 0x14b   : > { %2788 = vmatprep.subr.bf16.mxu1 %v3136_v26  ;;  %v3195_v25 = vld [vmem:[#allocation6 + $0x128] sm:$0xff]   ;;  %v3196_v26 = vld [vmem:[#allocation6 + $0xf0] sm:$0xff]  }
 0x14d   : > { %2767 = vmatpush3.bf16.msra.mxu0 %v3137_v27  ;;  %v3197_v27 = vld [vmem:[#allocation6 + $0xb0] sm:$0xff]  }
 0x14e   : > { %2789 = vmatpush3.bf16.msra.mxu1 %v3138_v28  ;;  %2768 = vmatprep.subr.bf16.mxu0 %v3139_v29  ;;  %v3198_v28 = vld [vmem:[#allocation6 + $0x130] sm:$0xff]   ;;  %v3199_v29 = vld [vmem:[#allocation6 + $0xf8] sm:$0xff]  }
 0x14f   : > { %2790 = vmatprep.subr.bf16.mxu1 %v3140_v30  ;;  %v3200_v30 = vld [vmem:[#allocation6 + $0xb8] sm:$0xff]  }
 0x151   : > { %2769 = vmatpush3.bf16.msra.mxu0 %v3141_v31  ;;  %v3201_v31 = vld [vmem:[#allocation6 + $0x138] sm:$0xff]  }
 0x152   : > { %2791 = vmatpush3.bf16.msra.mxu1 %v3142_v32  ;;  %2770 = vmatprep.subr.bf16.mxu0 %v3143_v33  ;;  %v3202_v32 = vld [vmem:[#allocation2 + $0x1c] ss:$0 sps:$4 sm:$0xff]   ;;  %v2589_v33 = vcombine.low %v3651_v7, %v3651_v7 }
 0x153   : > { %2792 = vmatprep.subr.bf16.mxu1 %v3144_v34 }
 0x155   : > { %2771 = vmatpush3.bf16.msra.mxu0 %v3145_v35 }
 0x156   : > { %2793 = vmatpush3.bf16.msra.mxu1 %v3146_v36  ;;  %2772 = vmatprep.subr.bf16.mxu0 %v3147_v37 }
 0x157   : > { %2794 = vmatprep.subr.bf16.mxu1 %v3148_v38 }
 0x159   : > { %2773 = vmatpush3.bf16.msra.mxu0 %v3149_v39 }
 0x15a   : > { %2795 = vmatpush3.bf16.msra.mxu1 %v3150_v40  ;;  %2904 = vmatprep.subr.bf16.mxu0 %v3371_v41 }
 0x15b   : > { %2811 = vmatprep.subr.bf16.mxu1 %v3151_v42 }
 0x15c   : > { %1629 = vmatmul.mubr.bf16.vlgmr.msra.gmra.mrb[12].mxu0 %v3587_v8  ;;  %v3159_v8 = vld [vmem:[#allocation6 + $0x10] sm:$0xff]  }
 0x15d   : > { %1669 = vmatmul.mubr.bf16.vlgmr.msra.gmra.mrb[12].mxu1 %v2544_v47  ;;  %2905 = vmatpush3.bf16.msra.mxu0 %v3152_v44  ;;  %v3203_v47 = vld [vmem:[#allocation8] ss:$8 sps:$4 sm:$0xff]  }
 0x15e   : > { %2812 = vmatpush3.bf16.msra.mxu1 %v3153_v45  ;;  %2092 = vmatprep.mubr.bf16.mxu1 %v3615_v46  ;;  %v3162_v46 = vld [vmem:[#allocation6 + $0x18] sm:$0xff]  }
 0x15f   : > { %2906 = vmatprep.subr.bf16.mxu0 %v3371_v41  ;;  %2813 = vmatprep.subr.bf16.mxu1 %v3154_v48  ;;  %v3205_v48 = vld [vmem:[#allocation8 + $0x4] ss:$8 sps:$4 sm:$0xff]  }
 0x160   : > { %2920 = vmatprep.mubr.msk.bf16.mxu0 %vm3373_vm7, %v3371_v41 }
 0x161   : > { %2907 = vmatpush3.bf16.msra.mxu0 %v3155_v49  ;;  %v3208_v49 = vld [vmem:[#allocation8 + $0x14] ss:$8 sps:$4 sm:$0xff]  }
 0x162   : > { %2814 = vmatpush3.bf16.msra.mxu1 %v3156_v50  ;;  %2908 = vmatprep.subr.bf16.mxu0 %v3371_v41  ;;  %v3206_v50 = vld [vmem:[#allocation8 + $0x10] ss:$8 sps:$4 sm:$0xff]  }
 0x163   : > { %2815 = vmatprep.subr.bf16.mxu1 %v3157_v51  ;;  %v3211_v51 = vld [vmem:[#allocation8 + $0x24] ss:$8 sps:$4 sm:$0xff]  }
 0x165   : > { %2909 = vmatpush3.bf16.msra.mxu0 %v3158_v52  ;;  %v3214_v52 = vld [vmem:[#allocation8 + $0x34] ss:$8 sps:$4 sm:$0xff]  }
 0x166   : > { %2816 = vmatpush3.bf16.msra.mxu1 %v3159_v8  ;;  %2910 = vmatprep.subr.bf16.mxu0 %v3371_v41  ;;  %v3212_v8 = vld [vmem:[#allocation8 + $0x30] ss:$8 sps:$4 sm:$0xff]  }
 0x167   : > { %2817 = vmatprep.subr.bf16.mxu1 %v3160_v53 }
 0x169   : > { %2911 = vmatpush3.bf16.msra.mxu0 %v3161_v54 }
 0x16a   : > { %2818 = vmatpush3.bf16.msra.mxu1 %v3162_v46  ;;  %2912 = vmatprep.subr.bf16.mxu0 %v3371_v41  ;;  %v3215_v46 = vld [vmem:[#allocation8 + $0x40] ss:$8 sps:$4 sm:$0xff]  }
 0x16b   : > { %2819 = vmatprep.subr.bf16.mxu1 %v3163_v55  ;;  %v3217_v55 = vld [vmem:[#allocation8 + $0x44] ss:$8 sps:$4 sm:$0xff]  }
 0x16d   : > { %2913 = vmatpush3.bf16.msra.mxu0 %v3164_v56 }
 0x16e   : > { %2820 = vmatpush3.bf16.msra.mxu1 %v3165_v57  ;;  %2914 = vmatprep.subr.bf16.mxu0 %v3371_v41 }
 0x16f   : > { %2821 = vmatprep.subr.bf16.mxu1 %v3166_v58 }
 0x171   : > { %2915 = vmatpush3.bf16.msra.mxu0 %v3167_v59 }
 0x172   : > { %2822 = vmatpush3.bf16.msra.mxu1 %v3168_v60  ;;  %2916 = vmatprep.subr.bf16.mxu0 %v3371_v41 }
 0x173   : > { %2823 = vmatprep.subr.bf16.mxu1 %v3169_v61 }
 0x175   : > { %2917 = vmatpush3.bf16.msra.mxu0 %v3170_v62 }
 0x176   : > { %2824 = vmatpush3.bf16.msra.mxu1 %v3171_v63  ;;  %2918 = vmatprep.subr.bf16.mxu0 %v3371_v41 }
 0x177   : > { %2825 = vmatprep.subr.bf16.mxu1 %v3172_v0  ;;  %v3220_v0 = vld [vmem:[#allocation8 + $0x54] ss:$8 sps:$4 sm:$0xff]  }
 0x179   : > { %2919 = vmatpush3.bf16.msra.mxu0 %v3173_v2  ;;  %v3218_v2 = vld [vmem:[#allocation8 + $0x50] ss:$8 sps:$4 sm:$0xff]  }
 0x17a   : > { %2826 = vmatpush3.bf16.msra.mxu1 %v3174_v3  ;;  %2833 = vmatprep.subr.bf16.mxu0 %v3176_v4  ;;  %v3223_v3 = vld [vmem:[#allocation8 + $0x64] ss:$8 sps:$4 sm:$0xff]   ;;  %v3221_v4 = vld [vmem:[#allocation8 + $0x60] ss:$8 sps:$4 sm:$0xff]  }
 0x17b   : > { %2924 = vmatprep.subr.bf16.mxu1 %v3371_v41 }
 0x17c   : > { %2921 = vmatmul.mubr.bf16.vlgmr.msra.gmra.mrb[16].mxu0 %v3175_v5  ;;  %v3226_v5 = vld [vmem:[#allocation8 + $0x74] ss:$8 sps:$4 sm:$0xff]  }
 0x17d   : > { %2093 = vmatmul.mubr.bf16.vlgmr.msra.gmra.mrb[16].mxu1 %v3629_v10  ;;  %2834 = vmatpush3.bf16.msra.mxu0 %v3177_v6  ;;  %v3188_v10 = vld [vmem:[#allocation6 + $0x98] sm:$0xff]  }
 0x17e   : > { %2132 = vmatprep.mubr.bf16.mxu0 %v2590_v13  ;;  %2925 = vmatpush3.bf16.msra.mxu1 %v3180_v11  ;;  %v3224_v6 = vld [vmem:[#allocation8 + $0x70] ss:$8 sps:$4 sm:$0xff]  }
 0x17f   : > { %2835 = vmatprep.subr.bf16.mxu0 %v3181_v12  ;;  %2926 = vmatprep.subr.bf16.mxu1 %v3371_v41 }
 0x180   : > { %2940 = vmatprep.mubr.msk.bf16.mxu1 %vm3373_vm7, %v3371_v41 }
 0x181   : > { %2836 = vmatpush3.bf16.msra.mxu0 %v3182_v14 }
 0x182   : > { %2927 = vmatpush3.bf16.msra.mxu1 %v3183_v15  ;;  %2837 = vmatprep.subr.bf16.mxu0 %v3184_v16 }
 0x183   : > { %2928 = vmatprep.subr.bf16.mxu1 %v3371_v41 }
 0x185   : > { %2838 = vmatpush3.bf16.msra.mxu0 %v3185_v17 }
 0x186   : > { %2929 = vmatpush3.bf16.msra.mxu1 %v3186_v18  ;;  %2839 = vmatprep.subr.bf16.mxu0 %v3187_v19 }
 0x187   : > { %2930 = vmatprep.subr.bf16.mxu1 %v3371_v41 }
 0x189   : > { %2840 = vmatpush3.bf16.msra.mxu0 %v3188_v10 }
 0x18a   : > { %2931 = vmatpush3.bf16.msra.mxu1 %v3189_v20  ;;  %2841 = vmatprep.subr.bf16.mxu0 %v3190_v21 }
 0x18b   : > { %2932 = vmatprep.subr.bf16.mxu1 %v3371_v41 }
 0x18d   : > { %2842 = vmatpush3.bf16.msra.mxu0 %v3191_v22 }
 0x18e   : > { %2933 = vmatpush3.bf16.msra.mxu1 %v3192_v23  ;;  %2843 = vmatprep.subr.bf16.mxu0 %v3193_v24 }
 0x18f   : > { %2934 = vmatprep.subr.bf16.mxu1 %v3371_v41 }
 0x191   : > { %2844 = vmatpush3.bf16.msra.mxu0 %v3194_v9 }
 0x192   : > { %2935 = vmatpush3.bf16.msra.mxu1 %v3195_v25  ;;  %2845 = vmatprep.subr.bf16.mxu0 %v3196_v26 }
 0x193   : > { %2936 = vmatprep.subr.bf16.mxu1 %v3371_v41 }
 0x195   : > { %2846 = vmatpush3.bf16.msra.mxu0 %v3197_v27 }
 0x196   : > { %2937 = vmatpush3.bf16.msra.mxu1 %v3198_v28  ;;  %2847 = vmatprep.subr.bf16.mxu0 %v3199_v29 }
 0x197   : > { %2938 = vmatprep.subr.bf16.mxu1 %v3371_v41 }
 0x199   : > { %2848 = vmatpush3.bf16.msra.mxu0 %v3200_v30 }
 0x19a   : > { %2939 = vmatpush3.bf16.msra.mxu1 %v3201_v31  ;;  %2302 = vmatprep.subr.bf16.mxu0 %v3205_v48 }
 0x19c   : > { %2133 = vmatmul.mubr.bf16.vlgmr.msra.gmra.mrb[20].mxu0 %v2589_v33 }
 0x19d   : > { %2941 = vmatmul.mubr.bf16.vlgmr.msra.gmra.mrb[20].mxu1 %v3202_v32  ;;  %2334 = vmatprep.mubr.bf16.mxu0 %v3365_v1  ;;  %v3209_v1 = vld [vmem:[#allocation8 + $0x20] ss:$8 sps:$4 sm:$0xff]  }
 0x19e   : > { %2303 = vmatpush1.bf16.msra.mxu0 %v3203_v47 }
 0x19f   : > { %2304 = vmatprep.subr.bf16.mxu0 %v3208_v49 }
 0x1a2   : > { %2305 = vmatpush1.bf16.msra.mxu0 %v3206_v50 }
 0x1a3   : > { %2306 = vmatprep.subr.bf16.mxu0 %v3211_v51 }
 0x1a6   : > { %2307 = vmatpush1.bf16.msra.mxu0 %v3209_v1 }
 0x1a7   : > { %2308 = vmatprep.subr.bf16.mxu0 %v3214_v52 }
 0x1aa   : > { %2309 = vmatpush1.bf16.msra.mxu0 %v3212_v8 }
 0x1ab   : > { %2310 = vmatprep.subr.bf16.mxu0 %v3217_v55 }
 0x1ae   : > { %2311 = vmatpush1.bf16.msra.mxu0 %v3215_v46 }
 0x1af   : > { %2312 = vmatprep.subr.bf16.mxu0 %v3220_v0 }
 0x1b2   : > { %2313 = vmatpush1.bf16.msra.mxu0 %v3218_v2 }
 0x1b3   : > { %2314 = vmatprep.subr.bf16.mxu0 %v3223_v3 }
 0x1b6   : > { %2315 = vmatpush1.bf16.msra.mxu0 %v3221_v4 }
 0x1b7   : > { %2316 = vmatprep.subr.bf16.mxu0 %v3226_v5 }
 0x1ba   : > { %2317 = vmatpush1.bf16.msra.mxu0 %v3224_v6 }
 0x1cf   : > { %v2668_v34 = vpop.f32.mrb[0].mxu0  ;;  %v2690_v35 = vpop.f32.mrb[0].mxu1 }
 0x1d0   : > { %v2669_v36 = vpop.f32.mrb[1].mxu0  ;;  %v2691_v37 = vpop.f32.mrb[1].mxu1 }
 0x1d1   : > { %v2670_v38 = vadd.f32 %v2669_v36, %v2668_v34  ;;  %v2692_v39 = vadd.f32 %v2691_v37, %v2690_v35  ;;  %v2671_v40 = vpop.f32.mrb[2].mxu0  ;;  %v2693_v42 = vpop.f32.mrb[2].mxu1 }
 0x1d2   : > { %v2672_v44 = vpop.f32.mrb[3].mxu0  ;;  %v2694_v41 = vpop.f32.mrb[3].mxu1 }
 0x1d3   : > { %v745_v45 = vadd.f32 %v2692_v39, %v2670_v38 }
 0x1ef   : > { %v784_v53 = vpop.f32.mrb[4].mxu0  ;;  %v2721_v54 = vpop.f32.mrb[4].mxu1 }
 0x1f0   : > { %v785_v56 = vadd.f32 %v784_v53, %v745_v45  ;;  %v2882_v57 = vpop.f32.mrb[5].mxu0  ;;  %v2722_v58 = vpop.f32.mrb[5].mxu1  ;;  %v2632_v53 = vld [vmem:[%s3696_s2] ss:$0 sm:$0xff] }
 0x1f1   : > { %v2723_v59 = vadd.f32 %v2722_v58, %v2721_v54  ;;  %v787_v60 = vpop.f32.mrb[6].mxu0  ;;  %v2724_v61 = vpop.f32.mrb[6].mxu1  ;;  %v2213_v57 = vshrl.u32 %v271_v43, 7 }
 0x1f2   : > { %v2883_v62 = vpop.f32.mrb[7].mxu0  ;;  %v2725_v63 = vpop.f32.mrb[7].mxu1 }
 0x1f3   : > { %v2218_v58 = vsub.s32 1, %v2213_v57  ;;  %v2214_v5 = vsub.s32 0, %v2213_v57 }
 0x20f   : > { %v2743_v7 = vpop.f32.mrb[8].mxu0 }
 0x210   : > { %v2744_v11 = vpop.f32.mrb[9].mxu0  ;;  %v1246_v12 = vpop.f32.mrb[8].mxu1 }
 0x211   : > { %v2745_v13 = vadd.f32 %v2744_v11, %v2743_v7  ;;  %v2746_v14 = vpop.f32.mrb[10].mxu0  ;;  %v2902_v15 = vpop.f32.mrb[9].mxu1 }
 0x212   : > { %v2747_v16 = vpop.f32.mrb[11].mxu0  ;;  %v1249_v17 = vpop.f32.mrb[10].mxu1 }
 0x213   : > { %v1207_v18 = vadd.f32 %v2745_v13, %v2723_v59  ;;  %v2903_v19 = vpop.f32.mrb[11].mxu1  ;;  %v2210_v59 = vld [vmem:[%s3698_s4] sm:$0x3] }
 0x214   : > { %v2219_v60 = vrot.slane %v2210_v59, %v2218_v58  ;;  %v2215_v43 = vrot.slane %v2210_v59, %v2214_v5 }
 0x215   : > { %v1247_v10 = vadd.f32 %v1246_v12, %v1207_v18 }
 0x217   : > { %v1253_v20 = vmax.f32 %v785_v56, %v1247_v10 }
 0x22f   : > { %v2774_v21 = vpop.f32.mrb[12].mxu0 }
 0x230   : > { %v2796_v22 = vpop.f32.mrb[12].mxu1  ;;  %v2775_v23 = vpop.f32.mrb[13].mxu0 }
 0x231   : > { %v2776_v24 = vadd.f32 %v2775_v23, %v2774_v21  ;;  %v2797_v9 = vpop.f32.mrb[13].mxu1  ;;  %v2777_v25 = vpop.f32.mrb[14].mxu0 }
 0x232   : > { %v2798_v26 = vadd.f32 %v2797_v9, %v2796_v22  ;;  %v2799_v27 = vpop.f32.mrb[14].mxu1  ;;  %v2778_v28 = vpop.f32.mrb[15].mxu0 }
 0x233   : > { %v2800_v29 = vpop.f32.mrb[15].mxu1 }
 0x234   : > { %v1671_v30 = vadd.f32 %v2798_v26, %v2776_v24 }
 0x24f   : > { %v1710_v31 = vpop.f32.mrb[16].mxu0 }
 0x250   : > { %v1711_v32 = vadd.f32 %v1710_v31, %v1671_v30  ;;  %v2827_v33 = vpop.f32.mrb[16].mxu1  ;;  %v2922_v34 = vpop.f32.mrb[17].mxu0 }
 0x251   : > { %v2828_v35 = vpop.f32.mrb[17].mxu1  ;;  %v1713_v36 = vpop.f32.mrb[18].mxu0 }
 0x252   : > { %v1717_v37 = vmax.f32 %v1253_v20, %v1711_v32  ;;  %v2829_v38 = vadd.f32 %v2828_v35, %v2827_v33  ;;  %v2830_v39 = vpop.f32.mrb[18].mxu1  ;;  %v2923_v40 = vpop.f32.mrb[19].mxu0 }
 0x253   : > { %v2831_v42 = vpop.f32.mrb[19].mxu1 }
 0x26f   : > { %v2849_v44 = vpop.f32.mrb[20].mxu0 }
 0x270   : > { %v2850_v41 = vpop.f32.mrb[21].mxu0  ;;  %v2174_v45 = vpop.f32.mrb[20].mxu1 }
 0x271   : > { %v2851_v47 = vadd.f32 %v2850_v41, %v2849_v44  ;;  %v2852_v48 = vpop.f32.mrb[22].mxu0  ;;  %v2942_v49 = vpop.f32.mrb[21].mxu1 }
 0x272   : > { %v2853_v50 = vpop.f32.mrb[23].mxu0  ;;  %v2177_v51 = vpop.f32.mrb[22].mxu1 }
 0x273   : > { %v2135_v1 = vadd.f32 %v2851_v47, %v2829_v38  ;;  %v2943_v52 = vpop.f32.mrb[23].mxu1 }
 0x275   : > { %v2175_v8 = vadd.f32 %v2174_v45, %v2135_v1 }
 0x277   : > { %v2181_v54 = vmax.f32 %v1717_v37, %v2175_v8 }
 0x279   : > { %v2191_v46 = vadd.f32 %v2632_v53, %v2181_v54 }
 0x27b   : > { %v2192_v55 = vmax.f32 %v2191_v46, 0.0 }
 0x27d   : > { %v2193_v56 = vpack.c.bf16 %v2192_v55, %v2192_v55 }
 0x27f   : > { %2335 = vmatmul.mubr.bf16.vlgmr.msra.gmra.mrb[24].mxu0 %v2193_v56 }
 0x352   : > { %v2336_v61 = vpop.f32.mrb[24].mxu0 }
 0x353   : > { %v2338_v62 = vpop.f32.mrb[25].mxu0  ;;  %v2337_v7 = vadd.f32 %v2336_v61, %v2215_v43 }
 0x354   : > { %v2339_v63 = vadd.f32 %v2338_v62, %v2219_v60  ;;  %v2340_v0 = vpop.f32.mrb[26].mxu0 }
 0x355   : > { %v2341_v2 = vpop.f32.mrb[27].mxu0  ;;  %v2343_v11 = vmax.f32 %v2337_v7, 0.0 }
 0x356   : > { %v2649_v3 = vmul.f32 -1.442695, %v2339_v63 }
 0x358   : > { %3227 = vpow2.f32 %v2649_v3 }
 0x362   : > { %v3228_v4 = vpop.eup %3227 }
 0x363   : > { %v2347_v6 = vadd.f32 1.0, %v3228_v4 }
 0x365   : > { %3229 = vrcp.f32 %v2347_v6 }
 0x36f   : > { %v3230_v12 = vpop.eup %3229 }
 0x370   : > { %v2350_v13 = vmul.f32 %v3230_v12, %v2343_v11  ;;  %v2351_v14 = vsub.f32 1.0, %v3230_v12 }
 0x372   : > { %v2352_v15 = vmul.f32 %v2351_v14, %v2192_v55 }
 0x374   : > { %v2353_v16 = vadd.f32 %v2352_v15, %v2350_v13 }
 0x376   : > { %v2354_v17 = vpack.c.bf16 %v2353_v16, %v2353_v16 }
 0x378   : > { %2355 = vst [vmem:[%s268_s26] sm:$0xf] %v2354_v17 }
 0x379 PF: > { %p16_p9 = scmp.ge.s32.totalorder %s3497_s12, 4   ;;  %s3711_s18 = smov %s3347_s19 }
 0x37a   : > { %s3712_s19 = smov %s3351_s20  ;;  %s3713_s20 = smov %s3506_s15 }
 0x37b   : > { %s3714_s21 = smov %s3497_s12  ;;  %18 = sbr.rel (!%p16_p9) target bundleno = 4 (0x4), region = 88 }
 0x382   :  { %2375 = vsyncpa [#allocation5], 1 }
 0x383   :  { %2377 = vsyncpa [#allocation5 + $0x1], 1 }
 0x384   :  { %2378 = vsyncpa [#allocation7], 1 }

</bundles_post_ra>
